<compile_context>
chip_gen: v7x
topology: tpu7x:2x2x1
jax: 0.10.0
libtpu: 0.0.40
codegen_flags: <defaults>
</compile_context>

<pallas_src>
import math
import functools

import jax
import jax.numpy as jnp
from jax import lax
from jax.experimental import pallas as pl
from jax.experimental.pallas import tpu as pltpu


def _attention_kernel(hq_ref, hkv_ref, wq_ref, bq_ref, wk_ref, bk_ref,
                      wv_ref, bv_ref, wo_ref, bo_ref, gamma_ref, beta_ref,
                      out_ref, q_scr, ctx_scr, m_scr, l_scr,
                      *, num_heads, head_size, ln_eps):
    kv = pl.program_id(2)
    last_kv = pl.num_programs(2) - 1

    # ---- init for this (batch, query-tile): Q projection + online-softmax state ----
    @pl.when(kv == 0)
    def _():
        x_q = hq_ref[0].astype(jnp.bfloat16)                               # (tq, H)
        scale = 1.0 / math.sqrt(head_size)
        qf = jnp.dot(x_q, wq_ref[...], preferred_element_type=jnp.float32)
        qf = (qf + bq_ref[...]) * scale                                    # fold 1/sqrt(d) into Q
        q_scr[...] = qf.astype(jnp.bfloat16)
        m_scr[...] = jnp.full(m_scr.shape, -jnp.inf, dtype=jnp.float32)
        l_scr[...] = jnp.zeros(l_scr.shape, dtype=jnp.float32)
        ctx_scr[...] = jnp.zeros(ctx_scr.shape, dtype=jnp.float32)

    # ---- K / V projections for this key tile (bf16 MXU operands, f32 accumulate) ----
    x_kv = hkv_ref[0].astype(jnp.bfloat16)                                 # (tk, H)
    k = (jnp.dot(x_kv, wk_ref[...], preferred_element_type=jnp.float32)
         + bk_ref[...]).astype(jnp.bfloat16)
    v = (jnp.dot(x_kv, wv_ref[...], preferred_element_type=jnp.float32)
         + bv_ref[...]).astype(jnp.bfloat16)
    q = q_scr[...]                                                         # (tq, H) bf16

    # ---- per-head online-softmax attention (static unroll; num_heads is small) ----
    for h in range(num_heads):
        lo = h * head_size
        hi = lo + head_size
        qh = q[:, lo:hi]                                                   # (tq, d)
        kh = k[:, lo:hi]                                                   # (tk, d)
        vh = v[:, lo:hi]                                                   # (tk, d)
        # Contract over head_size without materializing kh.T (MXU trans_b path).
        s = lax.dot_general(qh, kh, (((1,), (1,)), ((), ())),
                            preferred_element_type=jnp.float32)            # (tq, tk)
        m_prev = m_scr[:, h:h + 1]                                         # (tq, 1)
        m_new = jnp.maximum(m_prev, jnp.max(s, axis=-1, keepdims=True))
        alpha = jnp.exp(m_prev - m_new)
        p = jnp.exp(s - m_new)                                             # f32 softmax math
        l_scr[:, h:h + 1] = alpha * l_scr[:, h:h + 1] + jnp.sum(p, axis=-1, keepdims=True)
        ctx_scr[h] = alpha * ctx_scr[h] + jnp.dot(
            p.astype(jnp.bfloat16), vh, preferred_element_type=jnp.float32)
        m_scr[:, h:h + 1] = m_new

    # ---- finalize: fused per-head output projection + residual + LayerNorm ----
    @pl.when(kv == last_kv)
    def _():
        tq, H = q_scr.shape
        inv_l = pl.reciprocal(l_scr[...], approx=True)                     # (tq, nh), EUP
        o = jnp.zeros((tq, H), jnp.float32)
        for h in range(num_heads):
            ctx_h = (ctx_scr[h] * inv_l[:, h:h + 1]).astype(jnp.bfloat16)  # (tq, d)
            # Lane-dense N=H matmul per head; replaces concat + single dense.
            o = o + jnp.dot(ctx_h, wo_ref[h], preferred_element_type=jnp.float32)
        x_q = hq_ref[0].astype(jnp.float32)                                # residual in f32
        y = o + bo_ref[...] + x_q
        mean = jnp.mean(y, axis=-1, keepdims=True)
        var = jnp.mean(y * y, axis=-1, keepdims=True) - mean * mean        # one-pass variance
        y_norm = (y - mean) * lax.rsqrt(var + ln_eps)
        out_ref[0] = (y_norm * gamma_ref[...] + beta_ref[...]).astype(out_ref.dtype)


def bert_generation_attention(hidden_states, params, *, num_heads,
                              ln_eps=1e-12, block_q=256, block_k=256):
    """hidden_states: (B, S, H) float32.  params: dict of f32 weights (see init_params)."""
    B, S, H = hidden_states.shape
    head_size = H // num_heads
    tq = min(block_q, S)
    tk = min(block_k, S)
    assert S % tq == 0 and S % tk == 0, "seq length must be divisible by the tile sizes"

    # bf16 MXU operands (f32 accumulation inside the kernel).
    wq = params["wq"].astype(jnp.bfloat16)
    wk = params["wk"].astype(jnp.bfloat16)
    wv = params["wv"].astype(jnp.bfloat16)
    # Output projection reshaped head-major so the kernel indexes wo[h] via the
    # leading axis (no sublane slicing, no concat of per-head context).
    wo = params["wo"].reshape(num_heads, head_size, H).astype(jnp.bfloat16)
    # Biases / LayerNorm params as lane-dense (1, H) 2-D blocks, kept f32.
    bq = params["bq"].reshape(1, H)
    bk = params["bk"].reshape(1, H)
    bv = params["bv"].reshape(1, H)
    bo = params["bo"].reshape(1, H)
    gamma = params["ln_gamma"].reshape(1, H)
    beta = params["ln_beta"].reshape(1, H)

    kernel = functools.partial(_attention_kernel, num_heads=num_heads,
                               head_size=head_size, ln_eps=ln_eps)

    w2d = pl.BlockSpec((H, H), lambda b, i, j: (0, 0))
    p1h = pl.BlockSpec((1, H), lambda b, i, j: (0, 0))

    return pl.pallas_call(
        kernel,
        out_shape=jax.ShapeDtypeStruct((B, S, H), hidden_states.dtype),
        grid_spec=pltpu.PrefetchScalarGridSpec(
            num_scalar_prefetch=0,
            grid=(B, S // tq, S // tk),
            in_specs=[
                pl.BlockSpec((1, tq, H), lambda b, i, j: (b, i, 0)),   # query tile
                pl.BlockSpec((1, tk, H), lambda b, i, j: (b, j, 0)),   # key/value tile
                w2d, p1h,                                              # Wq, bq
                w2d, p1h,                                              # Wk, bk
                w2d, p1h,                                              # Wv, bv
                pl.BlockSpec((num_heads, head_size, H),
                             lambda b, i, j: (0, 0, 0)),               # Wo (head-major)
                p1h,                                                   # bo
                p1h, p1h,                                              # gamma, beta
            ],
            out_specs=pl.BlockSpec((1, tq, H), lambda b, i, j: (b, i, 0)),
            scratch_shapes=[
                pltpu.VMEM((tq, H), jnp.bfloat16),                     # scaled Q
                pltpu.VMEM((num_heads, tq, head_size), jnp.float32),   # context accumulator
                pltpu.VMEM((tq, num_heads), jnp.float32),              # running max
                pltpu.VMEM((tq, num_heads), jnp.float32),              # running sum
            ],
        ),
        compiler_params=pltpu.CompilerParams(
            dimension_semantics=("parallel", "parallel", "arbitrary"),
            vmem_limit_bytes=64 * 1024 * 1024,
        ),
    )(hidden_states, hidden_states,
      wq, bq, wk, bk, wv, bv, wo, bo, gamma, beta)


def init_params(key, hidden_size):
    """Deterministic synthetic init.  nn.Linear weights are stored pre-transposed
    as (in, out) so the kernel computes x @ W + b (== PyTorch x @ W.T + b)."""
    ks = jax.random.split(key, 8)
    scale = 0.02
    H = hidden_size
    return {
        "wq": scale * jax.random.normal(ks[0], (H, H), jnp.float32),
        "bq": scale * jax.random.normal(ks[1], (H,), jnp.float32),
        "wk": scale * jax.random.normal(ks[2], (H, H), jnp.float32),
        "bk": scale * jax.random.normal(ks[3], (H,), jnp.float32),
        "wv": scale * jax.random.normal(ks[4], (H, H), jnp.float32),
        "bv": scale * jax.random.normal(ks[5], (H,), jnp.float32),
        "wo": scale * jax.random.normal(ks[6], (H, H), jnp.float32),
        "bo": scale * jax.random.normal(ks[7], (H,), jnp.float32),
        "ln_gamma": jnp.ones((H,), jnp.float32),
        "ln_beta": jnp.zeros((H,), jnp.float32),
    }


def _reference(hidden_states, params, *, num_heads, ln_eps=1e-12):
    """Pure-JAX f32 reference mirroring the PyTorch forward (eval mode, absolute pos)."""
    B, S, H = hidden_states.shape
    d = H // num_heads
    x = hidden_states
    q = x @ params["wq"] + params["bq"]
    k = x @ params["wk"] + params["bk"]
    v = x @ params["wv"] + params["bv"]

    def split(t):
        return t.reshape(B, S, num_heads, d).transpose(0, 2, 1, 3)

    qh, kh, vh = split(q), split(k), split(v)
    scores = jnp.einsum("bhqd,bhkd->bhqk", qh, kh) / math.sqrt(d)
    probs = jax.nn.softmax(scores, axis=-1)
    ctx = jnp.einsum("bhqk,bhkd->bhqd", probs, vh)
    ctx = ctx.transpose(0, 2, 1, 3).reshape(B, S, H)
    o = ctx @ params["wo"] + params["bo"]
    y = o + x
    mean = jnp.mean(y, axis=-1, keepdims=True)
    var = jnp.mean((y - mean) ** 2, axis=-1, keepdims=True)
    return (y - mean) * jax.lax.rsqrt(var + ln_eps) * params["ln_gamma"] + params["ln_beta"]


if __name__ == "__main__":
    key = jax.random.PRNGKey(0)
    k_in, k_par, k_in2 = jax.random.split(key, 3)

    # Test 1: small config, single tile per batch: B=2, S=8, H=32, heads=4.
    B, S, H, NH = 2, 8, 32, 4
    hidden_states = jax.random.normal(k_in, (B, S, H), jnp.float32)
    params = init_params(k_par, H)

    out = bert_generation_attention(hidden_states, params, num_heads=NH)
    out = jax.block_until_ready(out)
    ref = _reference(hidden_states, params, num_heads=NH)
    assert out.shape == (B, S, H)
    # bf16 MXU operands vs f32 reference -> relaxed tolerance.
    assert jnp.allclose(out, ref, atol=2e-2, rtol=2e-2), "mismatch vs pure-JAX reference (test 1)"

    # Test 2: exercise the flash-style multi-tile path (grid over q and kv tiles).
    B2, S2 = 1, 16
    hidden_states2 = jax.random.normal(k_in2, (B2, S2, H), jnp.float32)
    out2 = bert_generation_attention(hidden_states2, params, num_heads=NH,
                                     block_q=8, block_k=8)
    out2 = jax.block_until_ready(out2)
    ref2 = _reference(hidden_states2, params, num_heads=NH)
    assert jnp.allclose(out2, ref2, atol=2e-2, rtol=2e-2), "mismatch vs pure-JAX reference (test 2)"

    print("KERNEL_OK")
</pallas_src>

<mosaic_0001>
module attributes {stable_mosaic.version = 11 : i64} {
  func.func @_attention_kernel(%arg0: i32, %arg1: i32, %arg2: i32, %arg3: memref<1x8x32xf32, #tpu.memory_space<vmem>>, %arg4: memref<1x8x32xf32, #tpu.memory_space<vmem>>, %arg5: memref<32x32xbf16, #tpu.memory_space<vmem>>, %arg6: memref<1x32xf32, #tpu.memory_space<vmem>>, %arg7: memref<32x32xbf16, #tpu.memory_space<vmem>>, %arg8: memref<1x32xf32, #tpu.memory_space<vmem>>, %arg9: memref<32x32xbf16, #tpu.memory_space<vmem>>, %arg10: memref<1x32xf32, #tpu.memory_space<vmem>>, %arg11: memref<4x8x32xbf16, #tpu.memory_space<vmem>>, %arg12: memref<1x32xf32, #tpu.memory_space<vmem>>, %arg13: memref<1x32xf32, #tpu.memory_space<vmem>>, %arg14: memref<1x32xf32, #tpu.memory_space<vmem>>, %arg15: memref<1x8x32xf32, #tpu.memory_space<vmem>>, %arg16: memref<8x32xbf16, #tpu.memory_space<vmem>>, %arg17: memref<4x8x8xf32, #tpu.memory_space<vmem>>, %arg18: memref<8x4xf32, #tpu.memory_space<vmem>>, %arg19: memref<8x4xf32, #tpu.memory_space<vmem>>) attributes {dimension_semantics = [#tpu.dimension_semantics<parallel>, #tpu.dimension_semantics<parallel>, #tpu.dimension_semantics<arbitrary>], iteration_bounds = array<i64: 2, 1, 1>, scalar_prefetch = 0 : i64, scratch_operands = 4 : i64, tpu.core_type = #tpu.core_type<tc>, window_params = [{transform_indices = @transform_0, window_bounds = array<i64: 1, 8, 32>}, {transform_indices = @transform_1, window_bounds = array<i64: 1, 8, 32>}, {pipeline_mode = #tpu.pipeline_mode<synchronous>, transform_indices = @transform_2, window_bounds = array<i64: 32, 32>}, {pipeline_mode = #tpu.pipeline_mode<synchronous>, transform_indices = @transform_3, window_bounds = array<i64: 1, 32>}, {pipeline_mode = #tpu.pipeline_mode<synchronous>, transform_indices = @transform_4, window_bounds = array<i64: 32, 32>}, {pipeline_mode = #tpu.pipeline_mode<synchronous>, transform_indices = @transform_5, window_bounds = array<i64: 1, 32>}, {pipeline_mode = #tpu.pipeline_mode<synchronous>, transform_indices = @transform_6, window_bounds = array<i64: 32, 32>}, {pipeline_mode = #tpu.pipeline_mode<synchronous>, transform_indices = @transform_7, window_bounds = array<i64: 1, 32>}, {pipeline_mode = #tpu.pipeline_mode<synchronous>, transform_indices = @transform_8, window_bounds = array<i64: 4, 8, 32>}, {pipeline_mode = #tpu.pipeline_mode<synchronous>, transform_indices = @transform_9, window_bounds = array<i64: 1, 32>}, {pipeline_mode = #tpu.pipeline_mode<synchronous>, transform_indices = @transform_10, window_bounds = array<i64: 1, 32>}, {pipeline_mode = #tpu.pipeline_mode<synchronous>, transform_indices = @transform_11, window_bounds = array<i64: 1, 32>}, {transform_indices = @transform_12, window_bounds = array<i64: 1, 8, 32>}]} {
    %c0_i32 = arith.constant 0 : i32
    %0 = arith.cmpi eq, %arg2, %c0_i32 : i32
    %1 = arith.extui %0 : i1 to i32
    %c0_i32_0 = arith.constant 0 : i32
    %2 = arith.cmpi ne, %1, %c0_i32_0 : i32
    scf.if %2 {
      %c0_85 = arith.constant 0 : index
      %c0_86 = arith.constant 0 : index
      %c0_87 = arith.constant 0 : index
      %142 = vector.load %arg3[%c0_85, %c0_86, %c0_87] : memref<1x8x32xf32, #tpu.memory_space<vmem>>, vector<1x8x32xf32>
      %143 = vector.shape_cast %142 : vector<1x8x32xf32> to vector<8x32xf32>
      %144 = arith.truncf %143 : vector<8x32xf32> to vector<8x32xbf16>
      %c0_88 = arith.constant 0 : index
      %c0_89 = arith.constant 0 : index
      %145 = vector.load %arg5[%c0_88, %c0_89] : memref<32x32xbf16, #tpu.memory_space<vmem>>, vector<32x32xbf16>
      %cst_90 = arith.constant dense<0.000000e+00> : vector<8x32xf32>
      %146 = tpu.matmul %144, %145, %cst_90 {dimension_numbers = #tpu.dot_dimension_numbers<[1], [0], [0], [1], [0, 0, 1, 1], [], []>} : vector<8x32xbf16>, vector<32x32xbf16>, vector<8x32xf32> -> vector<8x32xf32>
      %c0_91 = arith.constant 0 : index
      %c0_92 = arith.constant 0 : index
      %147 = vector.load %arg6[%c0_91, %c0_92] : memref<1x32xf32, #tpu.memory_space<vmem>>, vector<1x32xf32>
      %148 = vector.broadcast %147 : vector<1x32xf32> to vector<8x32xf32>
      %149 = arith.addf %146, %148 : vector<8x32xf32>
      %cst_93 = arith.constant 0.353553385 : f32
      %150 = vector.broadcast %cst_93 : f32 to vector<8x32xf32>
      %151 = arith.mulf %149, %150 : vector<8x32xf32>
      %152 = arith.truncf %151 : vector<8x32xf32> to vector<8x32xbf16>
      %c0_94 = arith.constant 0 : index
      %c0_95 = arith.constant 0 : index
      %153 = vector.load %arg16[%c0_94, %c0_95] : memref<8x32xbf16, #tpu.memory_space<vmem>>, vector<8x32xbf16>
      tpu.vector_store %arg16[%c0_94, %c0_95], %152 {strides = array<i32>} : memref<8x32xbf16, #tpu.memory_space<vmem>>, vector<8x32xbf16>,
      %cst_96 = arith.constant 0xFF800000 : f32
      %154 = vector.broadcast %cst_96 : f32 to vector<8x4xf32>
      %c0_97 = arith.constant 0 : index
      %c0_98 = arith.constant 0 : index
      %155 = vector.load %arg18[%c0_97, %c0_98] : memref<8x4xf32, #tpu.memory_space<vmem>>, vector<8x4xf32>
      tpu.vector_store %arg18[%c0_97, %c0_98], %154 {strides = array<i32>} : memref<8x4xf32, #tpu.memory_space<vmem>>, vector<8x4xf32>,
      %cst_99 = arith.constant 0.000000e+00 : f32
      %156 = vector.broadcast %cst_99 : f32 to vector<8x4xf32>
      %c0_100 = arith.constant 0 : index
      %c0_101 = arith.constant 0 : index
      %157 = vector.load %arg19[%c0_100, %c0_101] : memref<8x4xf32, #tpu.memory_space<vmem>>, vector<8x4xf32>
      tpu.vector_store %arg19[%c0_100, %c0_101], %156 {strides = array<i32>} : memref<8x4xf32, #tpu.memory_space<vmem>>, vector<8x4xf32>,
      %cst_102 = arith.constant 0.000000e+00 : f32
      %158 = vector.broadcast %cst_102 : f32 to vector<4x8x8xf32>
      %c0_103 = arith.constant 0 : index
      %c0_104 = arith.constant 0 : index
      %c0_105 = arith.constant 0 : index
      %159 = vector.load %arg17[%c0_103, %c0_104, %c0_105] : memref<4x8x8xf32, #tpu.memory_space<vmem>>, vector<4x8x8xf32>
      tpu.vector_store %arg17[%c0_103, %c0_104, %c0_105], %158 {strides = array<i32>} : memref<4x8x8xf32, #tpu.memory_space<vmem>>, vector<4x8x8xf32>,
    } else {
    }
    %c0 = arith.constant 0 : index
    %c0_1 = arith.constant 0 : index
    %c0_2 = arith.constant 0 : index
    %3 = vector.load %arg4[%c0, %c0_1, %c0_2] : memref<1x8x32xf32, #tpu.memory_space<vmem>>, vector<1x8x32xf32>
    %4 = vector.shape_cast %3 : vector<1x8x32xf32> to vector<8x32xf32>
    %5 = arith.truncf %4 : vector<8x32xf32> to vector<8x32xbf16>
    %c0_3 = arith.constant 0 : index
    %c0_4 = arith.constant 0 : index
    %6 = vector.load %arg7[%c0_3, %c0_4] : memref<32x32xbf16, #tpu.memory_space<vmem>>, vector<32x32xbf16>
    %cst = arith.constant dense<0.000000e+00> : vector<8x32xf32>
    %7 = tpu.matmul %5, %6, %cst {dimension_numbers = #tpu.dot_dimension_numbers<[1], [0], [0], [1], [0, 0, 1, 1], [], []>} : vector<8x32xbf16>, vector<32x32xbf16>, vector<8x32xf32> -> vector<8x32xf32>
    %c0_5 = arith.constant 0 : index
    %c0_6 = arith.constant 0 : index
    %8 = vector.load %arg8[%c0_5, %c0_6] : memref<1x32xf32, #tpu.memory_space<vmem>>, vector<1x32xf32>
    %9 = vector.broadcast %8 : vector<1x32xf32> to vector<8x32xf32>
    %10 = arith.addf %7, %9 : vector<8x32xf32>
    %11 = arith.truncf %10 : vector<8x32xf32> to vector<8x32xbf16>
    %c0_7 = arith.constant 0 : index
    %c0_8 = arith.constant 0 : index
    %12 = vector.load %arg9[%c0_7, %c0_8] : memref<32x32xbf16, #tpu.memory_space<vmem>>, vector<32x32xbf16>
    %cst_9 = arith.constant dense<0.000000e+00> : vector<8x32xf32>
    %13 = tpu.matmul %5, %12, %cst_9 {dimension_numbers = #tpu.dot_dimension_numbers<[1], [0], [0], [1], [0, 0, 1, 1], [], []>} : vector<8x32xbf16>, vector<32x32xbf16>, vector<8x32xf32> -> vector<8x32xf32>
    %c0_10 = arith.constant 0 : index
    %c0_11 = arith.constant 0 : index
    %14 = vector.load %arg10[%c0_10, %c0_11] : memref<1x32xf32, #tpu.memory_space<vmem>>, vector<1x32xf32>
    %15 = vector.broadcast %14 : vector<1x32xf32> to vector<8x32xf32>
    %16 = arith.addf %13, %15 : vector<8x32xf32>
    %17 = arith.truncf %16 : vector<8x32xf32> to vector<8x32xbf16>
    %c0_12 = arith.constant 0 : index
    %c0_13 = arith.constant 0 : index
    %18 = vector.load %arg16[%c0_12, %c0_13] : memref<8x32xbf16, #tpu.memory_space<vmem>>, vector<8x32xbf16>
    %19 = vector.extract_strided_slice %18 {offsets = [0, 0], sizes = [8, 8], strides = [1, 1]} : vector<8x32xbf16> to vector<8x8xbf16>
    %20 = vector.extract_strided_slice %11 {offsets = [0, 0], sizes = [8, 8], strides = [1, 1]} : vector<8x32xbf16> to vector<8x8xbf16>
    %21 = vector.extract_strided_slice %17 {offsets = [0, 0], sizes = [8, 8], strides = [1, 1]} : vector<8x32xbf16> to vector<8x8xbf16>
    %cst_14 = arith.constant dense<0.000000e+00> : vector<8x8xf32>
    %22 = tpu.matmul %19, %20, %cst_14 {dimension_numbers = #tpu.dot_dimension_numbers<[1], [1], [0], [0], [0, 0, 1, 0], [], []>} : vector<8x8xbf16>, vector<8x8xbf16>, vector<8x8xf32> -> vector<8x8xf32>
    %c0_15 = arith.constant 0 : index
    %c0_16 = arith.constant 0 : index
    %23 = vector.load %arg18[%c0_15, %c0_16] : memref<8x4xf32, #tpu.memory_space<vmem>>, vector<8x1xf32>
    %cst_17 = arith.constant dense<0xFF800000> : vector<8xf32>
    %24 = vector.multi_reduction <maximumf>, %22, %cst_17 [1] : vector<8x8xf32> to vector<8xf32>
    %25 = vector.shape_cast %24 : vector<8xf32> to vector<8x1xf32>
    %26 = arith.maximumf %23, %25 : vector<8x1xf32>
    %27 = arith.subf %23, %26 : vector<8x1xf32>
    %28 = math.exp %27 : vector<8x1xf32>
    %29 = vector.broadcast %26 : vector<8x1xf32> to vector<8x8xf32>
    %30 = arith.subf %22, %29 : vector<8x8xf32>
    %31 = math.exp %30 : vector<8x8xf32>
    %c0_18 = arith.constant 0 : index
    %c0_19 = arith.constant 0 : index
    %32 = vector.load %arg19[%c0_18, %c0_19] : memref<8x4xf32, #tpu.memory_space<vmem>>, vector<8x1xf32>
    %33 = arith.mulf %28, %32 : vector<8x1xf32>
    %cst_20 = arith.constant dense<0.000000e+00> : vector<8xf32>
    %34 = vector.multi_reduction <add>, %31, %cst_20 [1] : vector<8x8xf32> to vector<8xf32>
    %35 = vector.shape_cast %34 : vector<8xf32> to vector<8x1xf32>
    %36 = arith.addf %33, %35 : vector<8x1xf32>
    %c0_21 = arith.constant 0 : index
    %c0_22 = arith.constant 0 : index
    %37 = vector.load %arg19[%c0_21, %c0_22] : memref<8x4xf32, #tpu.memory_space<vmem>>, vector<8x1xf32>
    tpu.vector_store %arg19[%c0_21, %c0_22], %36 {strides = array<i32>} : memref<8x4xf32, #tpu.memory_space<vmem>>, vector<8x1xf32>,
    %c0_23 = arith.constant 0 : index
    %c0_24 = arith.constant 0 : index
    %c0_25 = arith.constant 0 : index
    %38 = vector.load %arg17[%c0_23, %c0_24, %c0_25] : memref<4x8x8xf32, #tpu.memory_space<vmem>>, vector<1x8x8xf32>
    %39 = vector.shape_cast %38 : vector<1x8x8xf32> to vector<8x8xf32>
    %40 = vector.broadcast %28 : vector<8x1xf32> to vector<8x8xf32>
    %41 = arith.mulf %40, %39 : vector<8x8xf32>
    %42 = arith.truncf %31 : vector<8x8xf32> to vector<8x8xbf16>
    %cst_26 = arith.constant dense<0.000000e+00> : vector<8x8xf32>
    %43 = tpu.matmul %42, %21, %cst_26 {dimension_numbers = #tpu.dot_dimension_numbers<[1], [0], [0], [1], [0, 0, 1, 1], [], []>} : vector<8x8xbf16>, vector<8x8xbf16>, vector<8x8xf32> -> vector<8x8xf32>
    %44 = arith.addf %41, %43 : vector<8x8xf32>
    %c0_27 = arith.constant 0 : index
    %c0_28 = arith.constant 0 : index
    %c0_29 = arith.constant 0 : index
    %45 = vector.load %arg17[%c0_27, %c0_28, %c0_29] : memref<4x8x8xf32, #tpu.memory_space<vmem>>, vector<1x8x8xf32>
    %46 = vector.shape_cast %45 : vector<1x8x8xf32> to vector<8x8xf32>
    %47 = vector.shape_cast %44 : vector<8x8xf32> to vector<1x8x8xf32>
    tpu.vector_store %arg17[%c0_27, %c0_28, %c0_29], %47 {strides = array<i32>} : memref<4x8x8xf32, #tpu.memory_space<vmem>>, vector<1x8x8xf32>,
    %c0_30 = arith.constant 0 : index
    %c0_31 = arith.constant 0 : index
    %48 = vector.load %arg18[%c0_30, %c0_31] : memref<8x4xf32, #tpu.memory_space<vmem>>, vector<8x1xf32>
    tpu.vector_store %arg18[%c0_30, %c0_31], %26 {strides = array<i32>} : memref<8x4xf32, #tpu.memory_space<vmem>>, vector<8x1xf32>,
    %49 = vector.extract_strided_slice %18 {offsets = [0, 8], sizes = [8, 8], strides = [1, 1]} : vector<8x32xbf16> to vector<8x8xbf16>
    %50 = vector.extract_strided_slice %11 {offsets = [0, 8], sizes = [8, 8], strides = [1, 1]} : vector<8x32xbf16> to vector<8x8xbf16>
    %51 = vector.extract_strided_slice %17 {offsets = [0, 8], sizes = [8, 8], strides = [1, 1]} : vector<8x32xbf16> to vector<8x8xbf16>
    %cst_32 = arith.constant dense<0.000000e+00> : vector<8x8xf32>
    %52 = tpu.matmul %49, %50, %cst_32 {dimension_numbers = #tpu.dot_dimension_numbers<[1], [1], [0], [0], [0, 0, 1, 0], [], []>} : vector<8x8xbf16>, vector<8x8xbf16>, vector<8x8xf32> -> vector<8x8xf32>
    %c0_33 = arith.constant 0 : index
    %c1 = arith.constant 1 : index
    %53 = vector.load %arg18[%c0_33, %c1] : memref<8x4xf32, #tpu.memory_space<vmem>>, vector<8x1xf32>
    %cst_34 = arith.constant dense<0xFF800000> : vector<8xf32>
    %54 = vector.multi_reduction <maximumf>, %52, %cst_34 [1] : vector<8x8xf32> to vector<8xf32>
    %55 = vector.shape_cast %54 : vector<8xf32> to vector<8x1xf32>
    %56 = arith.maximumf %53, %55 : vector<8x1xf32>
    %57 = arith.subf %53, %56 : vector<8x1xf32>
    %58 = math.exp %57 : vector<8x1xf32>
    %59 = vector.broadcast %56 : vector<8x1xf32> to vector<8x8xf32>
    %60 = arith.subf %52, %59 : vector<8x8xf32>
    %61 = math.exp %60 : vector<8x8xf32>
    %c0_35 = arith.constant 0 : index
    %c1_36 = arith.constant 1 : index
    %62 = vector.load %arg19[%c0_35, %c1_36] : memref<8x4xf32, #tpu.memory_space<vmem>>, vector<8x1xf32>
    %63 = arith.mulf %58, %62 : vector<8x1xf32>
    %cst_37 = arith.constant dense<0.000000e+00> : vector<8xf32>
    %64 = vector.multi_reduction <add>, %61, %cst_37 [1] : vector<8x8xf32> to vector<8xf32>
    %65 = vector.shape_cast %64 : vector<8xf32> to vector<8x1xf32>
    %66 = arith.addf %63, %65 : vector<8x1xf32>
    %c0_38 = arith.constant 0 : index
    %c1_39 = arith.constant 1 : index
    %67 = vector.load %arg19[%c0_38, %c1_39] : memref<8x4xf32, #tpu.memory_space<vmem>>, vector<8x1xf32>
    tpu.vector_store %arg19[%c0_38, %c1_39], %66 {strides = array<i32>} : memref<8x4xf32, #tpu.memory_space<vmem>>, vector<8x1xf32>,
    %c1_40 = arith.constant 1 : index
    %c0_41 = arith.constant 0 : index
    %c0_42 = arith.constant 0 : index
    %68 = vector.load %arg17[%c1_40, %c0_41, %c0_42] : memref<4x8x8xf32, #tpu.memory_space<vmem>>, vector<1x8x8xf32>
    %69 = vector.shape_cast %68 : vector<1x8x8xf32> to vector<8x8xf32>
    %70 = vector.broadcast %58 : vector<8x1xf32> to vector<8x8xf32>
    %71 = arith.mulf %70, %69 : vector<8x8xf32>
    %72 = arith.truncf %61 : vector<8x8xf32> to vector<8x8xbf16>
    %cst_43 = arith.constant dense<0.000000e+00> : vector<8x8xf32>
    %73 = tpu.matmul %72, %51, %cst_43 {dimension_numbers = #tpu.dot_dimension_numbers<[1], [0], [0], [1], [0, 0, 1, 1], [], []>} : vector<8x8xbf16>, vector<8x8xbf16>, vector<8x8xf32> -> vector<8x8xf32>
    %74 = arith.addf %71, %73 : vector<8x8xf32>
    %c1_44 = arith.constant 1 : index
    %c0_45 = arith.constant 0 : index
    %c0_46 = arith.constant 0 : index
    %75 = vector.load %arg17[%c1_44, %c0_45, %c0_46] : memref<4x8x8xf32, #tpu.memory_space<vmem>>, vector<1x8x8xf32>
    %76 = vector.shape_cast %75 : vector<1x8x8xf32> to vector<8x8xf32>
    %77 = vector.shape_cast %74 : vector<8x8xf32> to vector<1x8x8xf32>
    tpu.vector_store %arg17[%c1_44, %c0_45, %c0_46], %77 {strides = array<i32>} : memref<4x8x8xf32, #tpu.memory_space<vmem>>, vector<1x8x8xf32>,
    %c0_47 = arith.constant 0 : index
    %c1_48 = arith.constant 1 : index
    %78 = vector.load %arg18[%c0_47, %c1_48] : memref<8x4xf32, #tpu.memory_space<vmem>>, vector<8x1xf32>
    tpu.vector_store %arg18[%c0_47, %c1_48], %56 {strides = array<i32>} : memref<8x4xf32, #tpu.memory_space<vmem>>, vector<8x1xf32>,
    %79 = vector.extract_strided_slice %18 {offsets = [0, 16], sizes = [8, 8], strides = [1, 1]} : vector<8x32xbf16> to vector<8x8xbf16>
    %80 = vector.extract_strided_slice %11 {offsets = [0, 16], sizes = [8, 8], strides = [1, 1]} : vector<8x32xbf16> to vector<8x8xbf16>
    %81 = vector.extract_strided_slice %17 {offsets = [0, 16], sizes = [8, 8], strides = [1, 1]} : vector<8x32xbf16> to vector<8x8xbf16>
    %cst_49 = arith.constant dense<0.000000e+00> : vector<8x8xf32>
    %82 = tpu.matmul %79, %80, %cst_49 {dimension_numbers = #tpu.dot_dimension_numbers<[1], [1], [0], [0], [0, 0, 1, 0], [], []>} : vector<8x8xbf16>, vector<8x8xbf16>, vector<8x8xf32> -> vector<8x8xf32>
    %c0_50 = arith.constant 0 : index
    %c2 = arith.constant 2 : index
    %83 = vector.load %arg18[%c0_50, %c2] : memref<8x4xf32, #tpu.memory_space<vmem>>, vector<8x1xf32>
    %cst_51 = arith.constant dense<0xFF800000> : vector<8xf32>
    %84 = vector.multi_reduction <maximumf>, %82, %cst_51 [1] : vector<8x8xf32> to vector<8xf32>
    %85 = vector.shape_cast %84 : vector<8xf32> to vector<8x1xf32>
    %86 = arith.maximumf %83, %85 : vector<8x1xf32>
    %87 = arith.subf %83, %86 : vector<8x1xf32>
    %88 = math.exp %87 : vector<8x1xf32>
    %89 = vector.broadcast %86 : vector<8x1xf32> to vector<8x8xf32>
    %90 = arith.subf %82, %89 : vector<8x8xf32>
    %91 = math.exp %90 : vector<8x8xf32>
    %c0_52 = arith.constant 0 : index
    %c2_53 = arith.constant 2 : index
    %92 = vector.load %arg19[%c0_52, %c2_53] : memref<8x4xf32, #tpu.memory_space<vmem>>, vector<8x1xf32>
    %93 = arith.mulf %88, %92 : vector<8x1xf32>
    %cst_54 = arith.constant dense<0.000000e+00> : vector<8xf32>
    %94 = vector.multi_reduction <add>, %91, %cst_54 [1] : vector<8x8xf32> to vector<8xf32>
    %95 = vector.shape_cast %94 : vector<8xf32> to vector<8x1xf32>
    %96 = arith.addf %93, %95 : vector<8x1xf32>
    %c0_55 = arith.constant 0 : index
    %c2_56 = arith.constant 2 : index
    %97 = vector.load %arg19[%c0_55, %c2_56] : memref<8x4xf32, #tpu.memory_space<vmem>>, vector<8x1xf32>
    tpu.vector_store %arg19[%c0_55, %c2_56], %96 {strides = array<i32>} : memref<8x4xf32, #tpu.memory_space<vmem>>, vector<8x1xf32>,
    %c2_57 = arith.constant 2 : index
    %c0_58 = arith.constant 0 : index
    %c0_59 = arith.constant 0 : index
    %98 = vector.load %arg17[%c2_57, %c0_58, %c0_59] : memref<4x8x8xf32, #tpu.memory_space<vmem>>, vector<1x8x8xf32>
    %99 = vector.shape_cast %98 : vector<1x8x8xf32> to vector<8x8xf32>
    %100 = vector.broadcast %88 : vector<8x1xf32> to vector<8x8xf32>
    %101 = arith.mulf %100, %99 : vector<8x8xf32>
    %102 = arith.truncf %91 : vector<8x8xf32> to vector<8x8xbf16>
    %cst_60 = arith.constant dense<0.000000e+00> : vector<8x8xf32>
    %103 = tpu.matmul %102, %81, %cst_60 {dimension_numbers = #tpu.dot_dimension_numbers<[1], [0], [0], [1], [0, 0, 1, 1], [], []>} : vector<8x8xbf16>, vector<8x8xbf16>, vector<8x8xf32> -> vector<8x8xf32>
    %104 = arith.addf %101, %103 : vector<8x8xf32>
    %c2_61 = arith.constant 2 : index
    %c0_62 = arith.constant 0 : index
    %c0_63 = arith.constant 0 : index
    %105 = vector.load %arg17[%c2_61, %c0_62, %c0_63] : memref<4x8x8xf32, #tpu.memory_space<vmem>>, vector<1x8x8xf32>
    %106 = vector.shape_cast %105 : vector<1x8x8xf32> to vector<8x8xf32>
    %107 = vector.shape_cast %104 : vector<8x8xf32> to vector<1x8x8xf32>
    tpu.vector_store %arg17[%c2_61, %c0_62, %c0_63], %107 {strides = array<i32>} : memref<4x8x8xf32, #tpu.memory_space<vmem>>, vector<1x8x8xf32>,
    %c0_64 = arith.constant 0 : index
    %c2_65 = arith.constant 2 : index
    %108 = vector.load %arg18[%c0_64, %c2_65] : memref<8x4xf32, #tpu.memory_space<vmem>>, vector<8x1xf32>
    tpu.vector_store %arg18[%c0_64, %c2_65], %86 {strides = array<i32>} : memref<8x4xf32, #tpu.memory_space<vmem>>, vector<8x1xf32>,
    %109 = vector.extract_strided_slice %18 {offsets = [0, 24], sizes = [8, 8], strides = [1, 1]} : vector<8x32xbf16> to vector<8x8xbf16>
    %110 = vector.extract_strided_slice %11 {offsets = [0, 24], sizes = [8, 8], strides = [1, 1]} : vector<8x32xbf16> to vector<8x8xbf16>
    %111 = vector.extract_strided_slice %17 {offsets = [0, 24], sizes = [8, 8], strides = [1, 1]} : vector<8x32xbf16> to vector<8x8xbf16>
    %cst_66 = arith.constant dense<0.000000e+00> : vector<8x8xf32>
    %112 = tpu.matmul %109, %110, %cst_66 {dimension_numbers = #tpu.dot_dimension_numbers<[1], [1], [0], [0], [0, 0, 1, 0], [], []>} : vector<8x8xbf16>, vector<8x8xbf16>, vector<8x8xf32> -> vector<8x8xf32>
    %c0_67 = arith.constant 0 : index
    %c3 = arith.constant 3 : index
    %113 = vector.load %arg18[%c0_67, %c3] : memref<8x4xf32, #tpu.memory_space<vmem>>, vector<8x1xf32>
    %cst_68 = arith.constant dense<0xFF800000> : vector<8xf32>
    %114 = vector.multi_reduction <maximumf>, %112, %cst_68 [1] : vector<8x8xf32> to vector<8xf32>
    %115 = vector.shape_cast %114 : vector<8xf32> to vector<8x1xf32>
    %116 = arith.maximumf %113, %115 : vector<8x1xf32>
    %117 = arith.subf %113, %116 : vector<8x1xf32>
    %118 = math.exp %117 : vector<8x1xf32>
    %119 = vector.broadcast %116 : vector<8x1xf32> to vector<8x8xf32>
    %120 = arith.subf %112, %119 : vector<8x8xf32>
    %121 = math.exp %120 : vector<8x8xf32>
    %c0_69 = arith.constant 0 : index
    %c3_70 = arith.constant 3 : index
    %122 = vector.load %arg19[%c0_69, %c3_70] : memref<8x4xf32, #tpu.memory_space<vmem>>, vector<8x1xf32>
    %123 = arith.mulf %118, %122 : vector<8x1xf32>
    %cst_71 = arith.constant dense<0.000000e+00> : vector<8xf32>
    %124 = vector.multi_reduction <add>, %121, %cst_71 [1] : vector<8x8xf32> to vector<8xf32>
    %125 = vector.shape_cast %124 : vector<8xf32> to vector<8x1xf32>
    %126 = arith.addf %123, %125 : vector<8x1xf32>
    %c0_72 = arith.constant 0 : index
    %c3_73 = arith.constant 3 : index
    %127 = vector.load %arg19[%c0_72, %c3_73] : memref<8x4xf32, #tpu.memory_space<vmem>>, vector<8x1xf32>
    tpu.vector_store %arg19[%c0_72, %c3_73], %126 {strides = array<i32>} : memref<8x4xf32, #tpu.memory_space<vmem>>, vector<8x1xf32>,
    %c3_74 = arith.constant 3 : index
    %c0_75 = arith.constant 0 : index
    %c0_76 = arith.constant 0 : index
    %128 = vector.load %arg17[%c3_74, %c0_75, %c0_76] : memref<4x8x8xf32, #tpu.memory_space<vmem>>, vector<1x8x8xf32>
    %129 = vector.shape_cast %128 : vector<1x8x8xf32> to vector<8x8xf32>
    %130 = vector.broadcast %118 : vector<8x1xf32> to vector<8x8xf32>
    %131 = arith.mulf %130, %129 : vector<8x8xf32>
    %132 = arith.truncf %121 : vector<8x8xf32> to vector<8x8xbf16>
    %cst_77 = arith.constant dense<0.000000e+00> : vector<8x8xf32>
    %133 = tpu.matmul %132, %111, %cst_77 {dimension_numbers = #tpu.dot_dimension_numbers<[1], [0], [0], [1], [0, 0, 1, 1], [], []>} : vector<8x8xbf16>, vector<8x8xbf16>, vector<8x8xf32> -> vector<8x8xf32>
    %134 = arith.addf %131, %133 : vector<8x8xf32>
    %c3_78 = arith.constant 3 : index
    %c0_79 = arith.constant 0 : index
    %c0_80 = arith.constant 0 : index
    %135 = vector.load %arg17[%c3_78, %c0_79, %c0_80] : memref<4x8x8xf32, #tpu.memory_space<vmem>>, vector<1x8x8xf32>
    %136 = vector.shape_cast %135 : vector<1x8x8xf32> to vector<8x8xf32>
    %137 = vector.shape_cast %134 : vector<8x8xf32> to vector<1x8x8xf32>
    tpu.vector_store %arg17[%c3_78, %c0_79, %c0_80], %137 {strides = array<i32>} : memref<4x8x8xf32, #tpu.memory_space<vmem>>, vector<1x8x8xf32>,
    %c0_81 = arith.constant 0 : index
    %c3_82 = arith.constant 3 : index
    %138 = vector.load %arg18[%c0_81, %c3_82] : memref<8x4xf32, #tpu.memory_space<vmem>>, vector<8x1xf32>
    tpu.vector_store %arg18[%c0_81, %c3_82], %116 {strides = array<i32>} : memref<8x4xf32, #tpu.memory_space<vmem>>, vector<8x1xf32>,
    %c0_i32_83 = arith.constant 0 : i32
    %139 = arith.cmpi eq, %arg2, %c0_i32_83 : i32
    %140 = arith.extui %139 : i1 to i32
    %c0_i32_84 = arith.constant 0 : i32
    %141 = arith.cmpi ne, %140, %c0_i32_84 : i32
    scf.if %141 {
      %c0_85 = arith.constant 0 : index
      %c0_86 = arith.constant 0 : index
      %142 = vector.load %arg19[%c0_85, %c0_86] : memref<8x4xf32, #tpu.memory_space<vmem>>, vector<8x4xf32>
      %143 = tpu.reciprocal %142 {approx = true} : vector<8x4xf32> -> vector<8x4xf32>
      %cst_87 = arith.constant 0.000000e+00 : f32
      %144 = vector.broadcast %cst_87 : f32 to vector<8x32xf32>
      %c0_88 = arith.constant 0 : index
      %c0_89 = arith.constant 0 : index
      %c0_90 = arith.constant 0 : index
      %145 = vector.load %arg17[%c0_88, %c0_89, %c0_90] : memref<4x8x8xf32, #tpu.memory_space<vmem>>, vector<1x8x8xf32>
      %146 = vector.shape_cast %145 : vector<1x8x8xf32> to vector<8x8xf32>
      %147 = vector.extract_strided_slice %143 {offsets = [0, 0], sizes = [8, 1], strides = [1, 1]} : vector<8x4xf32> to vector<8x1xf32>
      %148 = vector.broadcast %147 : vector<8x1xf32> to vector<8x8xf32>
      %149 = arith.mulf %146, %148 : vector<8x8xf32>
      %150 = arith.truncf %149 : vector<8x8xf32> to vector<8x8xbf16>
      %c0_91 = arith.constant 0 : index
      %c0_92 = arith.constant 0 : index
      %c0_93 = arith.constant 0 : index
      %151 = vector.load %arg11[%c0_91, %c0_92, %c0_93] : memref<4x8x32xbf16, #tpu.memory_space<vmem>>, vector<1x8x32xbf16>
      %152 = vector.shape_cast %151 : vector<1x8x32xbf16> to vector<8x32xbf16>
      %cst_94 = arith.constant dense<0.000000e+00> : vector<8x32xf32>
      %153 = tpu.matmul %150, %152, %cst_94 {dimension_numbers = #tpu.dot_dimension_numbers<[1], [0], [0], [1], [0, 0, 1, 1], [], []>} : vector<8x8xbf16>, vector<8x32xbf16>, vector<8x32xf32> -> vector<8x32xf32>
      %154 = arith.addf %144, %153 : vector<8x32xf32>
      %c1_95 = arith.constant 1 : index
      %c0_96 = arith.constant 0 : index
      %c0_97 = arith.constant 0 : index
      %155 = vector.load %arg17[%c1_95, %c0_96, %c0_97] : memref<4x8x8xf32, #tpu.memory_space<vmem>>, vector<1x8x8xf32>
      %156 = vector.shape_cast %155 : vector<1x8x8xf32> to vector<8x8xf32>
      %157 = vector.extract_strided_slice %143 {offsets = [0, 1], sizes = [8, 1], strides = [1, 1]} : vector<8x4xf32> to vector<8x1xf32>
      %158 = vector.broadcast %157 : vector<8x1xf32> to vector<8x8xf32>
      %159 = arith.mulf %156, %158 : vector<8x8xf32>
      %160 = arith.truncf %159 : vector<8x8xf32> to vector<8x8xbf16>
      %c1_98 = arith.constant 1 : index
      %c0_99 = arith.constant 0 : index
      %c0_100 = arith.constant 0 : index
      %161 = vector.load %arg11[%c1_98, %c0_99, %c0_100] : memref<4x8x32xbf16, #tpu.memory_space<vmem>>, vector<1x8x32xbf16>
      %162 = vector.shape_cast %161 : vector<1x8x32xbf16> to vector<8x32xbf16>
      %cst_101 = arith.constant dense<0.000000e+00> : vector<8x32xf32>
      %163 = tpu.matmul %160, %162, %cst_101 {dimension_numbers = #tpu.dot_dimension_numbers<[1], [0], [0], [1], [0, 0, 1, 1], [], []>} : vector<8x8xbf16>, vector<8x32xbf16>, vector<8x32xf32> -> vector<8x32xf32>
      %164 = arith.addf %154, %163 : vector<8x32xf32>
      %c2_102 = arith.constant 2 : index
      %c0_103 = arith.constant 0 : index
      %c0_104 = arith.constant 0 : index
      %165 = vector.load %arg17[%c2_102, %c0_103, %c0_104] : memref<4x8x8xf32, #tpu.memory_space<vmem>>, vector<1x8x8xf32>
      %166 = vector.shape_cast %165 : vector<1x8x8xf32> to vector<8x8xf32>
      %167 = vector.extract_strided_slice %143 {offsets = [0, 2], sizes = [8, 1], strides = [1, 1]} : vector<8x4xf32> to vector<8x1xf32>
      %168 = vector.broadcast %167 : vector<8x1xf32> to vector<8x8xf32>
      %169 = arith.mulf %166, %168 : vector<8x8xf32>
      %170 = arith.truncf %169 : vector<8x8xf32> to vector<8x8xbf16>
      %c2_105 = arith.constant 2 : index
      %c0_106 = arith.constant 0 : index
      %c0_107 = arith.constant 0 : index
      %171 = vector.load %arg11[%c2_105, %c0_106, %c0_107] : memref<4x8x32xbf16, #tpu.memory_space<vmem>>, vector<1x8x32xbf16>
      %172 = vector.shape_cast %171 : vector<1x8x32xbf16> to vector<8x32xbf16>
      %cst_108 = arith.constant dense<0.000000e+00> : vector<8x32xf32>
      %173 = tpu.matmul %170, %172, %cst_108 {dimension_numbers = #tpu.dot_dimension_numbers<[1], [0], [0], [1], [0, 0, 1, 1], [], []>} : vector<8x8xbf16>, vector<8x32xbf16>, vector<8x32xf32> -> vector<8x32xf32>
      %174 = arith.addf %164, %173 : vector<8x32xf32>
      %c3_109 = arith.constant 3 : index
      %c0_110 = arith.constant 0 : index
      %c0_111 = arith.constant 0 : index
      %175 = vector.load %arg17[%c3_109, %c0_110, %c0_111] : memref<4x8x8xf32, #tpu.memory_space<vmem>>, vector<1x8x8xf32>
      %176 = vector.shape_cast %175 : vector<1x8x8xf32> to vector<8x8xf32>
      %177 = vector.extract_strided_slice %143 {offsets = [0, 3], sizes = [8, 1], strides = [1, 1]} : vector<8x4xf32> to vector<8x1xf32>
      %178 = vector.broadcast %177 : vector<8x1xf32> to vector<8x8xf32>
      %179 = arith.mulf %176, %178 : vector<8x8xf32>
      %180 = arith.truncf %179 : vector<8x8xf32> to vector<8x8xbf16>
      %c3_112 = arith.constant 3 : index
      %c0_113 = arith.constant 0 : index
      %c0_114 = arith.constant 0 : index
      %181 = vector.load %arg11[%c3_112, %c0_113, %c0_114] : memref<4x8x32xbf16, #tpu.memory_space<vmem>>, vector<1x8x32xbf16>
      %182 = vector.shape_cast %181 : vector<1x8x32xbf16> to vector<8x32xbf16>
      %cst_115 = arith.constant dense<0.000000e+00> : vector<8x32xf32>
      %183 = tpu.matmul %180, %182, %cst_115 {dimension_numbers = #tpu.dot_dimension_numbers<[1], [0], [0], [1], [0, 0, 1, 1], [], []>} : vector<8x8xbf16>, vector<8x32xbf16>, vector<8x32xf32> -> vector<8x32xf32>
      %184 = arith.addf %174, %183 : vector<8x32xf32>
      %c0_116 = arith.constant 0 : index
      %c0_117 = arith.constant 0 : index
      %c0_118 = arith.constant 0 : index
      %185 = vector.load %arg3[%c0_116, %c0_117, %c0_118] : memref<1x8x32xf32, #tpu.memory_space<vmem>>, vector<1x8x32xf32>
      %186 = vector.shape_cast %185 : vector<1x8x32xf32> to vector<8x32xf32>
      %c0_119 = arith.constant 0 : index
      %c0_120 = arith.constant 0 : index
      %187 = vector.load %arg12[%c0_119, %c0_120] : memref<1x32xf32, #tpu.memory_space<vmem>>, vector<1x32xf32>
      %188 = vector.broadcast %187 : vector<1x32xf32> to vector<8x32xf32>
      %189 = arith.addf %184, %188 : vector<8x32xf32>
      %190 = arith.addf %189, %186 : vector<8x32xf32>
      %cst_121 = arith.constant dense<0.000000e+00> : vector<8xf32>
      %191 = vector.multi_reduction <add>, %190, %cst_121 [1] : vector<8x32xf32> to vector<8xf32>
      %192 = vector.shape_cast %191 : vector<8xf32> to vector<8x1xf32>
      %cst_122 = arith.constant 3.200000e+01 : f32
      %193 = vector.broadcast %cst_122 : f32 to vector<8x1xf32>
      %194 = arith.divf %192, %193 : vector<8x1xf32>
      %195 = arith.mulf %190, %190 : vector<8x32xf32>
      %cst_123 = arith.constant dense<0.000000e+00> : vector<8xf32>
      %196 = vector.multi_reduction <add>, %195, %cst_123 [1] : vector<8x32xf32> to vector<8xf32>
      %197 = vector.shape_cast %196 : vector<8xf32> to vector<8x1xf32>
      %cst_124 = arith.constant 3.200000e+01 : f32
      %198 = vector.broadcast %cst_124 : f32 to vector<8x1xf32>
      %199 = arith.divf %197, %198 : vector<8x1xf32>
      %200 = arith.mulf %194, %194 : vector<8x1xf32>
      %201 = arith.subf %199, %200 : vector<8x1xf32>
      %202 = vector.broadcast %194 : vector<8x1xf32> to vector<8x32xf32>
      %203 = arith.subf %190, %202 : vector<8x32xf32>
      %cst_125 = arith.constant 9.99999996E-13 : f32
      %204 = vector.broadcast %cst_125 : f32 to vector<8x1xf32>
      %205 = arith.addf %201, %204 : vector<8x1xf32>
      %206 = math.rsqrt %205 : vector<8x1xf32>
      %207 = vector.broadcast %206 : vector<8x1xf32> to vector<8x32xf32>
      %208 = arith.mulf %203, %207 : vector<8x32xf32>
      %c0_126 = arith.constant 0 : index
      %c0_127 = arith.constant 0 : index
      %209 = vector.load %arg13[%c0_126, %c0_127] : memref<1x32xf32, #tpu.memory_space<vmem>>, vector<1x32xf32>
      %210 = vector.broadcast %209 : vector<1x32xf32> to vector<8x32xf32>
      %211 = arith.mulf %208, %210 : vector<8x32xf32>
      %c0_128 = arith.constant 0 : index
      %c0_129 = arith.constant 0 : index
      %212 = vector.load %arg14[%c0_128, %c0_129] : memref<1x32xf32, #tpu.memory_space<vmem>>, vector<1x32xf32>
      %213 = vector.broadcast %212 : vector<1x32xf32> to vector<8x32xf32>
      %214 = arith.addf %211, %213 : vector<8x32xf32>
      %c0_130 = arith.constant 0 : index
      %c0_131 = arith.constant 0 : index
      %c0_132 = arith.constant 0 : index
      %215 = vector.load %arg15[%c0_130, %c0_131, %c0_132] : memref<1x8x32xf32, #tpu.memory_space<vmem>>, vector<1x8x32xf32>
      %216 = vector.shape_cast %215 : vector<1x8x32xf32> to vector<8x32xf32>
      %217 = vector.shape_cast %214 : vector<8x32xf32> to vector<1x8x32xf32>
      tpu.vector_store %arg15[%c0_130, %c0_131, %c0_132], %217 {strides = array<i32>} : memref<1x8x32xf32, #tpu.memory_space<vmem>>, vector<1x8x32xf32>,
    } else {
    }
    return
  }
  func.func @transform_0(%arg0: i32, %arg1: i32, %arg2: i32) -> (i32, i32, i32) {
    %c0_i32 = arith.constant 0 : i32
    %c0_i32_0 = arith.constant 0 : i32
    return %arg0, %arg1, %c0_i32 : i32, i32, i32
  }
  func.func @transform_1(%arg0: i32, %arg1: i32, %arg2: i32) -> (i32, i32, i32) {
    %c0_i32 = arith.constant 0 : i32
    %c0_i32_0 = arith.constant 0 : i32
    return %arg0, %arg2, %c0_i32 : i32, i32, i32
  }
  func.func @transform_2(%arg0: i32, %arg1: i32, %arg2: i32) -> (i32, i32) {
    %c0_i32 = arith.constant 0 : i32
    %c0_i32_0 = arith.constant 0 : i32
    %c0_i32_1 = arith.constant 0 : i32
    return %c0_i32, %c0_i32_0 : i32, i32
  }
  func.func @transform_3(%arg0: i32, %arg1: i32, %arg2: i32) -> (i32, i32) {
    %c0_i32 = arith.constant 0 : i32
    %c0_i32_0 = arith.constant 0 : i32
    %c0_i32_1 = arith.constant 0 : i32
    return %c0_i32, %c0_i32_0 : i32, i32
  }
  func.func @transform_4(%arg0: i32, %arg1: i32, %arg2: i32) -> (i32, i32) {
    %c0_i32 = arith.constant 0 : i32
    %c0_i32_0 = arith.constant 0 : i32
    %c0_i32_1 = arith.constant 0 : i32
    return %c0_i32, %c0_i32_0 : i32, i32
  }
  func.func @transform_5(%arg0: i32, %arg1: i32, %arg2: i32) -> (i32, i32) {
    %c0_i32 = arith.constant 0 : i32
    %c0_i32_0 = arith.constant 0 : i32
    %c0_i32_1 = arith.constant 0 : i32
    return %c0_i32, %c0_i32_0 : i32, i32
  }
  func.func @transform_6(%arg0: i32, %arg1: i32, %arg2: i32) -> (i32, i32) {
    %c0_i32 = arith.constant 0 : i32
    %c0_i32_0 = arith.constant 0 : i32
    %c0_i32_1 = arith.constant 0 : i32
    return %c0_i32, %c0_i32_0 : i32, i32
  }
  func.func @transform_7(%arg0: i32, %arg1: i32, %arg2: i32) -> (i32, i32) {
    %c0_i32 = arith.constant 0 : i32
    %c0_i32_0 = arith.constant 0 : i32
    %c0_i32_1 = arith.constant 0 : i32
    return %c0_i32, %c0_i32_0 : i32, i32
  }
  func.func @transform_8(%arg0: i32, %arg1: i32, %arg2: i32) -> (i32, i32, i32) {
    %c0_i32 = arith.constant 0 : i32
    %c0_i32_0 = arith.constant 0 : i32
    %c0_i32_1 = arith.constant 0 : i32
    %c0_i32_2 = arith.constant 0 : i32
    return %c0_i32, %c0_i32_0, %c0_i32_1 : i32, i32, i32
  }
  func.func @transform_9(%arg0: i32, %arg1: i32, %arg2: i32) -> (i32, i32) {
    %c0_i32 = arith.constant 0 : i32
    %c0_i32_0 = arith.constant 0 : i32
    %c0_i32_1 = arith.constant 0 : i32
    return %c0_i32, %c0_i32_0 : i32, i32
  }
  func.func @transform_10(%arg0: i32, %arg1: i32, %arg2: i32) -> (i32, i32) {
    %c0_i32 = arith.constant 0 : i32
    %c0_i32_0 = arith.constant 0 : i32
    %c0_i32_1 = arith.constant 0 : i32
    return %c0_i32, %c0_i32_0 : i32, i32
  }
  func.func @transform_11(%arg0: i32, %arg1: i32, %arg2: i32) -> (i32, i32) {
    %c0_i32 = arith.constant 0 : i32
    %c0_i32_0 = arith.constant 0 : i32
    %c0_i32_1 = arith.constant 0 : i32
    return %c0_i32, %c0_i32_0 : i32, i32
  }
  func.func @transform_12(%arg0: i32, %arg1: i32, %arg2: i32) -> (i32, i32, i32) {
    %c0_i32 = arith.constant 0 : i32
    %c0_i32_0 = arith.constant 0 : i32
    return %arg0, %arg1, %c0_i32 : i32, i32, i32
  }
}

</mosaic_0001>

<bundles_post_ra>
// kernel: tpu_custom_call.1
= control target key start
LH: loop header
LB: loop body
LE: loop exit
PB: predicated region body
PF: predicated region fallthrough
CT: control target
= control target key end

     0   :  { %s3468_s0 = inlined_call_operand.hbm [shape: f32[2,8,32], index: 0, kind: input, shape index: {}]   ;;  %s3469_s1 = inlined_call_operand.hbm [shape: f32[2,8,32], index: 1, kind: input, shape index: {}]   ;;  %s3470_s2 = inlined_call_operand.hbm [shape: bf16[32,32], index: 2, kind: input, shape index: {}]   ;;  %s3471_s3 = inlined_call_operand.hbm [shape: f32[1,32], index: 3, kind: input, shape index: {}]   ;;  %s3472_s4 = inlined_call_operand.hbm [shape: bf16[32,32], index: 4, kind: input, shape index: {}]   ;;  %s3473_s5 = inlined_call_operand.hbm [shape: f32[1,32], index: 5, kind: input, shape index: {}]   ;;  %s3474_s6 = inlined_call_operand.hbm [shape: bf16[32,32], index: 6, kind: input, shape index: {}]   ;;  %s3475_s7 = inlined_call_operand.hbm [shape: f32[1,32], index: 7, kind: input, shape index: {}]   ;;  %s3476_s8 = inlined_call_operand.hbm [shape: bf16[4,8,32], index: 8, kind: input, shape index: {}]   ;;  %s3477_s9 = inlined_call_operand.hbm [shape: f32[1,32], index: 9, kind: input, shape index: {}]   ;;  %s3478_s10 = inlined_call_operand.hbm [shape: f32[1,32], index: 10, kind: input, shape index: {}]   ;;  %s3479_s11 = inlined_call_operand.hbm [shape: f32[1,32], index: 11, kind: input, shape index: {}]   ;;  %s3480_s12 = inlined_call_operand.hbm [shape: f32[2,8,32], index: 12, kind: output, shape index: {}]  }
   0x1   :  { %3494 = sst [smem:[#allocation39_spill]] %s3468_s0 }
   0x2   :  { %3495 = sst [smem:[#allocation40_spill]] %s3469_s1 }
   0x3   :  { %3496 = sst [smem:[#allocation41_spill]] %s3470_s2 }
   0x4   :  { %3497 = sst [smem:[#allocation42_spill]] %s3471_s3 }
   0x5   :  { %3498 = sst [smem:[#allocation43_spill]] %s3472_s4 }
   0x6   :  { %3499 = sst [smem:[#allocation44_spill]] %s3473_s5 }
   0x7   :  { %3500 = sst [smem:[#allocation45_spill]] %s3474_s6 }
   0x8   :  { %3501 = sst [smem:[#allocation46_spill]] %s3475_s7 }
   0x9   :  { %3502 = sst [smem:[#allocation47_spill]] %s3476_s8 }
   0xa   :  { %3503 = sst [smem:[#allocation48_spill]] %s3480_s12 }
   0xb   :  { %17 = vsyncpa [#allocation7], 0 }
   0xc   :  { %19 = vsyncpa [#allocation7 + $0x1], 0 }
   0xd   :  { %20 = vsyncpa [#allocation10], 0 }
   0xe   :  { %22 = vsyncpa [#allocation10 + $0x1], 0 }
   0xf   :  { %23 = vsyncpa [#allocation13], 0 }
  0x10   :  { %24 = vsyncpa [#allocation16], 0 }
  0x11   :  { %25 = vsyncpa [#allocation19], 0 }
  0x12   :  { %26 = vsyncpa [#allocation22], 0 }
  0x13   :  { %27 = vsyncpa [#allocation25], 0 }
  0x14   :  { %28 = vsyncpa [#allocation8], 0 }
  0x15   :  { %30 = vsyncpa [#allocation8 + $0x1], 0  ;;  %s2824_s21 = smov 0   ;;  %s2826_s22 = smov 0  }
  0x16   :  { %s2828_s23 = smov 0   ;;  %s2830_s24 = smov 0  }
  0x17   :  { %s2832_s25 = smov 0   ;;  %s2834_s26 = smov 0  }
  0x18 LB: > { %3504 = sst [smem:[#allocation36_spill]] %s2724_s24  ;;  %s2855_s27 = sadd.s32 4294967295, %s2732_s26   ;;  %s2732_s26 = sphi %s2834_s26, %s36_s26   ;;  %s2728_s25 = sphi %s2832_s25, %s3553_s25   ;;  %s2724_s24 = sphi %s2830_s24, %s3552_s24   ;;  %s2720_s23 = sphi %s2828_s23, %s3551_s23   ;;  %s2716_s22 = sphi %s2826_s22, %s3550_s22   ;;  %s2712_s21 = sphi %s2824_s21, %s3549_s21  }
  0x19   : > { %3505 = sst [smem:[#allocation37_spill]] %s2855_s27  ;;  %p1872_p0 = scmp.ge.s32.totalorder %s2732_s26, 1 }
  0x1a   : > { %p3488_p1 = scmp.eq.s32.totalorder %s2855_s27, 0  ;;  %p354_p2 = scmp.lt.s32.totalorder %s2732_s26, 3 }
  0x1b   : > { %s2734_s29 = smov [#allocation11]   ;;  %s2735_s14 = smov [#allocation12]  }
  0x1c   : > { %p2860_p3 = pnand %p1872_p0, %p354_p2  ;;  %s366_s30 = sshll.u32 %s2734_s29, 4  ;;  %s2864_s30 = int_to_ptr.vmem [resolvable:$true] %s366_s30 }
  0x1d   : > { %s380_s15 = sshll.u32 %s2735_s14, 4  ;;  %s2736_s16 = smov [#allocation15]   ;;  %s2875_s15 = int_to_ptr.vmem [resolvable:$true] %s380_s15 }
  0x1e   : > { %s3506_s28 = scalar_select %p2860_p3, 1, 0 }
  0x1f   : > { %p2109_p4 = pneg %p2860_p3  ;;  %s2877_s17 = sshll.u32 %s2736_s16, 4  ;;  %s405_s17 = int_to_ptr.vmem [resolvable:$true] %s2877_s17 }
  0x20   : > { %3507 = sst [smem:[#allocation38_spill]] %s3506_s28  ;;  %s3509_s2 = sld [smem:[#allocation41_spill]] }
  0x21   : > { %p2871_p6 = pnand %p2109_p4, %p3488_p1 }
  0x23   : > { %p2887_p8 = pneg %p2871_p6 }
  0x26   : > { %s2282_s20 = scalar_lea.hbm %s3509_s2, 256 }
  0x27   : > { %p2283_p7 = scmp.ne.s32.totalorder %s3509_s2, %s2282_s20  ;;  %p2289_p11 = scmp.lt.u32.totalorder %s2282_s20, %s3509_s2 }
  0x29   : > { %p2285_p9 = pnand %p2887_p8, %p2283_p7 }
  0x2b   : > { %p2286_p10 = pneg %p2285_p9 }
  0x2d   : > { %p2291_p12 = pnand %p2289_p11, %p2286_p10 }
  0x2f   : > { %2294 = shalt.err (!%p2291_p12)
}
  0x30   : > { %s2295_s12 = scalar_lea.vmem %s2864_s30, 256  ;;  %p2303_p4 = scmp.lt.s32.totalorder %s2864_s30, %s2864_s30 }
  0x31   : > { %p2296_p13 = scmp.ne.s32.totalorder %s2864_s30, %s2295_s12  ;;  %p2304_p5 = scmp.lt.s32.totalorder %s2295_s12, %s2295_s12 }
  0x33   : > { %p2298_p0 = pnand %p2296_p13, %p2887_p8  ;;  %p2305_p7 = por %p2304_p5, %p2303_p4 }
  0x35   : > { %p2299_p2 = pneg %p2298_p0 }
  0x37   : > { %p2306_p9 = pnand %p2305_p7, %p2299_p2 }
  0x39   : > { %2309 = shalt.err (!%p2306_p9)
}
  0x3a   : > { %s3490_s18 = smov 64   ;;  %s2738_s19 = smov 4  }
  0x3b   : > { %2112 = dma.hbm_to_vmem [thread:$0]  (!%p2871_p6), %s3509_s2, 256, %s2864_s30, [#allocation10], %s3490_s18, %s3490_s18, %s2738_s19  }
  0x3c   : > { %s3511_s3 = sld [smem:[#allocation42_spill]] }
  0x42   : > { %s2310_s12 = scalar_lea.hbm %s3511_s3, 16 }
  0x43   : > { %p2311_p5 = scmp.ne.s32.totalorder %s3511_s3, %s2310_s12  ;;  %p2317_p12 = scmp.lt.u32.totalorder %s2310_s12, %s3511_s3 }
  0x45   : > { %p2313_p10 = pnand %p2311_p5, %p2887_p8 }
  0x47   : > { %p2314_p11 = pneg %p2313_p10 }
  0x49   : > { %p2319_p13 = pnand %p2317_p12, %p2314_p11 }
  0x4b   : > { %2322 = shalt.err (!%p2319_p13)
}
  0x4c   : > { %s2323_s30 = scalar_lea.vmem %s2875_s15, 16  ;;  %s2330_s1 = scalar_lea.vmem %s2875_s15, 32 }
  0x4d   : > { %p2324_p0 = scmp.ne.s32.totalorder %s2875_s15, %s2323_s30  ;;  %p2331_p7 = scmp.lt.s32.totalorder %s2875_s15, %s2875_s15 }
  0x4e   : > { %p2332_p9 = scmp.lt.s32.totalorder %s2330_s1, %s2323_s30 }
  0x4f   : > { %p2326_p2 = pnand %p2324_p0, %p2887_p8 }
  0x50   : > { %p2333_p5 = por %p2332_p9, %p2331_p7 }
  0x51   : > { %p2327_p4 = pneg %p2326_p2 }
  0x53   : > { %p2334_p10 = pnand %p2333_p5, %p2327_p4 }
  0x55   : > { %2337 = shalt.err (!%p2334_p10)
}
  0x56   : > { %2115 = dma.hbm_to_vmem [thread:$0]  (!%p2871_p6), %s3511_s3, 16, %s2875_s15, [#allocation13]  }
  0x57   : > { %s3512_s5 = sld [smem:[#allocation44_spill]] }
  0x5d   : > { %s2338_s29 = scalar_lea.hbm %s3512_s5, 16 }
  0x5e   : > { %p2339_p11 = scmp.ne.s32.totalorder %s3512_s5, %s2338_s29  ;;  %p2345_p0 = scmp.lt.u32.totalorder %s2338_s29, %s3512_s5 }
  0x60   : > { %p2341_p12 = pnand %p2339_p11, %p2887_p8 }
  0x62   : > { %p2342_p13 = pneg %p2341_p12 }
  0x64   : > { %p2347_p2 = pnand %p2345_p0, %p2342_p13 }
  0x66   : > { %2350 = shalt.err (!%p2347_p2)
}
  0x67   : > { %s2351_s1 = scalar_lea.vmem %s405_s17, 16  ;;  %s2358_s15 = scalar_lea.vmem %s405_s17, 32 }
  0x68   : > { %p2352_p4 = scmp.ne.s32.totalorder %s405_s17, %s2351_s1  ;;  %p2359_p5 = scmp.lt.s32.totalorder %s405_s17, %s405_s17 }
  0x69   : > { %p2360_p10 = scmp.lt.s32.totalorder %s2358_s15, %s2351_s1 }
  0x6a   : > { %p2354_p7 = pnand %p2352_p4, %p2887_p8 }
  0x6b   : > { %p2361_p1 = por %p2360_p10, %p2359_p5 }
  0x6c   : > { %p2355_p9 = pneg %p2354_p7 }
  0x6e   : > { %p2362_p3 = pnand %p2361_p1, %p2355_p9 }
  0x70   : > { %2365 = shalt.err (!%p2362_p3)
}
  0x71   : > { %2121 = dma.hbm_to_vmem [thread:$0]  (!%p2871_p6), %s3512_s5, 16, %s405_s17, [#allocation16]  }
  0x72   : > { %s2739_s28 = smov [#allocation18]   ;;  %s2740_s29 = smov [#allocation21]  }
  0x73   : > { %s428_s20 = sshll.u32 %s2739_s28, 4  ;;  %s452_s14 = sshll.u32 %s2740_s29, 4  ;;  %s429_s20 = int_to_ptr.vmem [resolvable:$true] %s428_s20  ;;  %s453_s14 = int_to_ptr.vmem [resolvable:$true] %s452_s14 }
  0x74   : > { %s3513_s7 = sld [smem:[#allocation46_spill]] }
  0x7a   : > { %s2366_s30 = scalar_lea.hbm %s3513_s7, 16 }
  0x7b   : > { %p2367_p1 = scmp.ne.s32.totalorder %s3513_s7, %s2366_s30  ;;  %p2373_p12 = scmp.lt.u32.totalorder %s2366_s30, %s3513_s7 }
  0x7d   : > { %p2369_p3 = pnand %p2367_p1, %p2887_p8 }
  0x7f   : > { %p2370_p11 = pneg %p2369_p3 }
  0x81   : > { %p2375_p13 = pnand %p2373_p12, %p2370_p11 }
  0x83   : > { %2378 = shalt.err (!%p2375_p13)
}
  0x84   : > { %s2379_s17 = scalar_lea.vmem %s429_s20, 16  ;;  %s2386_s27 = scalar_lea.vmem %s429_s20, 32 }
  0x85   : > { %p2380_p0 = scmp.ne.s32.totalorder %s429_s20, %s2379_s17  ;;  %p2387_p7 = scmp.lt.s32.totalorder %s429_s20, %s429_s20 }
  0x86   : > { %p2388_p9 = scmp.lt.s32.totalorder %s2386_s27, %s2379_s17 }
  0x87   : > { %p2382_p2 = pnand %p2380_p0, %p2887_p8 }
  0x88   : > { %p2389_p5 = por %p2388_p9, %p2387_p7 }
  0x89   : > { %p2383_p4 = pneg %p2382_p2 }
  0x8b   : > { %p2390_p10 = pnand %p2389_p5, %p2383_p4 }
  0x8d   : > { %2393 = shalt.err (!%p2390_p10)
}
  0x8e   : > { %2127 = dma.hbm_to_vmem [thread:$0]  (!%p2871_p6), %s3513_s7, 16, %s429_s20, [#allocation19]  }
  0x8f   : > { %s2394_s12 = scalar_lea.hbm %s3477_s9, 16 }
  0x90   : > { %p2395_p1 = scmp.ne.s32.totalorder %s3477_s9, %s2394_s12  ;;  %p2401_p12 = scmp.lt.u32.totalorder %s2394_s12, %s3477_s9 }
  0x92   : > { %p2397_p3 = pnand %p2395_p1, %p2887_p8 }
  0x94   : > { %p2398_p11 = pneg %p2397_p3 }
  0x96   : > { %p2403_p13 = pnand %p2401_p12, %p2398_p11 }
  0x98   : > { %2406 = shalt.err (!%p2403_p13)
}
  0x99   : > { %s2407_s17 = scalar_lea.vmem %s453_s14, 16  ;;  %s2414_s20 = scalar_lea.vmem %s453_s14, 32 }
  0x9a   : > { %p2408_p0 = scmp.ne.s32.totalorder %s453_s14, %s2407_s17  ;;  %p2415_p7 = scmp.lt.s32.totalorder %s453_s14, %s453_s14 }
  0x9b   : > { %p2416_p9 = scmp.lt.s32.totalorder %s2414_s20, %s2407_s17 }
  0x9c   : > { %p2410_p2 = pnand %p2408_p0, %p2887_p8 }
  0x9d   : > { %p2417_p5 = por %p2416_p9, %p2415_p7 }
  0x9e   : > { %p2411_p4 = pneg %p2410_p2 }
  0xa0   : > { %p2418_p10 = pnand %p2417_p5, %p2411_p4 }
  0xa2   : > { %2421 = shalt.err (!%p2418_p10)
}
  0xa3   : > { %2133 = dma.hbm_to_vmem [thread:$0]  (!%p2871_p6), %s3477_s9, 16, %s453_s14, [#allocation22]  }
  0xa4   : > { %s2741_s29 = smov [#allocation14]   ;;  %s2742_s16 = smov [#allocation17]  }
  0xa5   : > { %s390_s18 = sshll.u32 %s2741_s29, 4  ;;  %s414_s12 = sshll.u32 %s2742_s16, 4  ;;  %s391_s18 = int_to_ptr.vmem [resolvable:$true] %s390_s18  ;;  %s415_s12 = int_to_ptr.vmem [resolvable:$true] %s414_s12 }
  0xa6   : > { %s3514_s4 = sld [smem:[#allocation43_spill]] }
  0xac   : > { %s2422_s15 = scalar_lea.hbm %s3514_s4, 256 }
  0xad   : > { %p2423_p1 = scmp.ne.s32.totalorder %s3514_s4, %s2422_s15  ;;  %p2429_p12 = scmp.lt.u32.totalorder %s2422_s15, %s3514_s4 }
  0xaf   : > { %p2425_p3 = pnand %p2423_p1, %p2887_p8 }
  0xb1   : > { %p2426_p11 = pneg %p2425_p3 }
  0xb3   : > { %p2431_p13 = pnand %p2429_p12, %p2426_p11 }
  0xb5   : > { %2434 = shalt.err (!%p2431_p13)
}
  0xb6   : > { %s2435_s14 = scalar_lea.vmem %s391_s18, 256  ;;  %p2443_p7 = scmp.lt.s32.totalorder %s391_s18, %s391_s18 }
  0xb7   : > { %p2436_p0 = scmp.ne.s32.totalorder %s391_s18, %s2435_s14  ;;  %p2444_p9 = scmp.lt.s32.totalorder %s2435_s14, %s2435_s14 }
  0xb9   : > { %p2438_p2 = pnand %p2436_p0, %p2887_p8  ;;  %p2445_p5 = por %p2444_p9, %p2443_p7 }
  0xbb   : > { %p2439_p4 = pneg %p2438_p2 }
  0xbd   : > { %p2446_p10 = pnand %p2445_p5, %p2439_p4 }
  0xbf   : > { %2449 = shalt.err (!%p2446_p10)
}
  0xc0   : > { %s3515_s28 = smov 64   ;;  %s3516_s6 = sld [smem:[#allocation45_spill]] }
  0xc1   : > { %2118 = dma.hbm_to_vmem [thread:$0]  (!%p2871_p6), %s3514_s4, 256, %s391_s18, [#allocation13], %s3515_s28, %s3515_s28, %s2738_s19  }
  0xc6   : > { %s2450_s15 = scalar_lea.hbm %s3516_s6, 256 }
  0xc7   : > { %p2451_p1 = scmp.ne.s32.totalorder %s3516_s6, %s2450_s15  ;;  %p2457_p12 = scmp.lt.u32.totalorder %s2450_s15, %s3516_s6 }
  0xc9   : > { %p2453_p3 = pnand %p2451_p1, %p2887_p8 }
  0xcb   : > { %p2454_p11 = pneg %p2453_p3 }
  0xcd   : > { %p2459_p13 = pnand %p2457_p12, %p2454_p11 }
  0xcf   : > { %2462 = shalt.err (!%p2459_p13)
}
  0xd0   : > { %s2463_s14 = scalar_lea.vmem %s415_s12, 256  ;;  %p2471_p7 = scmp.lt.s32.totalorder %s415_s12, %s415_s12 }
  0xd1   : > { %p2464_p0 = scmp.ne.s32.totalorder %s415_s12, %s2463_s14  ;;  %p2472_p9 = scmp.lt.s32.totalorder %s2463_s14, %s2463_s14 }
  0xd3   : > { %p2466_p2 = pnand %p2464_p0, %p2887_p8  ;;  %p2473_p5 = por %p2472_p9, %p2471_p7 }
  0xd5   : > { %p2467_p4 = pneg %p2466_p2 }
  0xd7   : > { %p2474_p10 = pnand %p2473_p5, %p2467_p4 }
  0xd9   : > { %2477 = shalt.err (!%p2474_p10)
}
  0xda   : > { %2124 = dma.hbm_to_vmem [thread:$0]  (!%p2871_p6), %s3516_s6, 256, %s415_s12, [#allocation16], %s3515_s28, %s3515_s28, %s2738_s19  }
  0xdb   : > { %s2743_s16 = smov [#allocation20]   ;;  %s2744_s1 = smov [#allocation23]  }
  0xdc   : > { %s438_s30 = sshll.u32 %s2743_s16, 4  ;;  %s463_s15 = sshll.u32 %s2744_s1, 4  ;;  %s439_s30 = int_to_ptr.vmem [resolvable:$true] %s438_s30  ;;  %s464_s15 = int_to_ptr.vmem [resolvable:$true] %s463_s15 }
  0xdd   : > { %s3517_s8 = sld [smem:[#allocation47_spill]] }
  0xe3   : > { %s2478_s20 = scalar_lea.hbm %s3517_s8, 256 }
  0xe4   : > { %p2479_p1 = scmp.ne.s32.totalorder %s3517_s8, %s2478_s20  ;;  %p2485_p12 = scmp.lt.u32.totalorder %s2478_s20, %s3517_s8 }
  0xe6   : > { %p2481_p3 = pnand %p2479_p1, %p2887_p8 }
  0xe8   : > { %p2482_p11 = pneg %p2481_p3 }
  0xea   : > { %p2487_p13 = pnand %p2485_p12, %p2482_p11 }
  0xec   : > { %2490 = shalt.err (!%p2487_p13)
}
  0xed   : > { %s2491_s12 = scalar_lea.vmem %s439_s30, 256  ;;  %p2499_p7 = scmp.lt.s32.totalorder %s439_s30, %s439_s30 }
  0xee   : > { %p2492_p0 = scmp.ne.s32.totalorder %s439_s30, %s2491_s12  ;;  %p2500_p9 = scmp.lt.s32.totalorder %s2491_s12, %s2491_s12 }
  0xf0   : > { %p2494_p2 = pnand %p2492_p0, %p2887_p8  ;;  %p2501_p5 = por %p2500_p9, %p2499_p7 }
  0xf2   : > { %p2495_p4 = pneg %p2494_p2 }
  0xf4   : > { %p2502_p10 = pnand %p2501_p5, %p2495_p4 }
  0xf6   : > { %2505 = shalt.err (!%p2502_p10)
}
  0xf7   : > { %2130 = dma.hbm_to_vmem [thread:$0]  (!%p2871_p6), %s3517_s8, 256, %s439_s30, [#allocation19], %s3515_s28, %s3515_s28, %s2738_s19  }
  0xf8   : > { %s2506_s0 = scalar_lea.hbm %s3478_s10, 16 }
  0xf9   : > { %p2507_p1 = scmp.ne.s32.totalorder %s3478_s10, %s2506_s0  ;;  %p2513_p12 = scmp.lt.u32.totalorder %s2506_s0, %s3478_s10 }
  0xfb   : > { %p2509_p3 = pnand %p2507_p1, %p2887_p8 }
  0xfd   : > { %p2510_p11 = pneg %p2509_p3 }
  0xff   : > { %p2515_p13 = pnand %p2513_p12, %p2510_p11 }
 0x101   : > { %2518 = shalt.err (!%p2515_p13)
}
 0x102   : > { %s2519_s18 = scalar_lea.vmem %s464_s15, 16  ;;  %s2526_s19 = scalar_lea.vmem %s464_s15, 32 }
 0x103   : > { %p2520_p0 = scmp.ne.s32.totalorder %s464_s15, %s2519_s18  ;;  %p2527_p7 = scmp.lt.s32.totalorder %s464_s15, %s464_s15 }
 0x104   : > { %p2528_p9 = scmp.lt.s32.totalorder %s2526_s19, %s2519_s18 }
 0x105   : > { %p2522_p2 = pnand %p2520_p0, %p2887_p8 }
 0x106   : > { %p2529_p5 = por %p2528_p9, %p2527_p7 }
 0x107   : > { %p2523_p4 = pneg %p2522_p2 }
 0x109   : > { %p2530_p10 = pnand %p2529_p5, %p2523_p4 }
 0x10b   : > { %2533 = shalt.err (!%p2530_p10)
}
 0x10c   : > { %2136 = dma.hbm_to_vmem [thread:$0]  (!%p2871_p6), %s3478_s10, 16, %s464_s15, [#allocation22]  }
 0x10d   : > { %s2745_s12 = smov [#allocation24]   ;;  %s2534_s1 = scalar_lea.hbm %s3479_s11, 16 }
 0x10e   : > { %s474_s2 = sshll.u32 %s2745_s12, 4  ;;  %p2535_p1 = scmp.ne.s32.totalorder %s3479_s11, %s2534_s1  ;;  %s475_s2 = int_to_ptr.vmem [resolvable:$true] %s474_s2 }
 0x10f   : > { %p2541_p12 = scmp.lt.u32.totalorder %s2534_s1, %s3479_s11 }
 0x110   : > { %p2537_p3 = pnand %p2535_p1, %p2887_p8 }
 0x112   : > { %p2538_p11 = pneg %p2537_p3 }
 0x114   : > { %p2543_p13 = pnand %p2541_p12, %p2538_p11 }
 0x116   : > { %2546 = shalt.err (!%p2543_p13)
}
 0x117   : > { %s2547_s15 = scalar_lea.vmem %s475_s2, 16  ;;  %s2554_s14 = scalar_lea.vmem %s475_s2, 32 }
 0x118   : > { %p2548_p0 = scmp.ne.s32.totalorder %s475_s2, %s2547_s15  ;;  %p2555_p7 = scmp.lt.s32.totalorder %s475_s2, %s475_s2 }
 0x119   : > { %p2556_p9 = scmp.lt.s32.totalorder %s2554_s14, %s2547_s15 }
 0x11a   : > { %p2550_p2 = pnand %p2548_p0, %p2887_p8 }
 0x11b   : > { %p2557_p5 = por %p2556_p9, %p2555_p7 }
 0x11c   : > { %p2551_p4 = pneg %p2550_p2 }
 0x11e   : > { %p2558_p10 = pnand %p2557_p5, %p2551_p4 }
 0x120   : > { %2561 = shalt.err (!%p2558_p10)
}
 0x121   : > { %s3518_s24 = sld [smem:[#allocation37_spill]]  ;;  %s1871_s28 = sadd.s32 4294967294, %s2732_s26  }
 0x122   : > { %2139 = dma.hbm_to_vmem [thread:$0]  (!%p2871_p6), %s3479_s11, 16, %s475_s2, [#allocation25]  }
 0x123   : > { %s55_s30 = sadd.s32 1, %s2728_s25  ;;  %s64_s13 = sadd.s32 1, %s2720_s23 }
 0x124   : > { %p57_p8 = scmp.ge.s32.totalorder %s55_s30, 2  ;;  %p71_p1 = scmp.ne.s32.totalorder %s2720_s23, %s2716_s22 }
 0x125   : > { %p72_p3 = scmp.eq.s32.totalorder %s2732_s26, 0  ;;  %p77_p12 = scmp.ne.s32.totalorder %s2716_s22, %s2712_s21 }
 0x126   : > { %s3555_s30 = smov (%p57_p8, %s55_s30), 0  ;;  %p347_p7 = scmp.eq.s32.totalorder %s1871_s28, 1 }
 0x127   : > { %p3097_p11 = por %p72_p3, %p71_p1  ;;  %s59_s2 = ssub.s32 %s2728_s25, %s3555_s30 }
 0x128   : > { %p341_p6 = scmp.eq.s32.totalorder %s3518_s24, 1  ;;  %p62_p13 = scmp.eq.s32.totalorder %s59_s2, 0 }
 0x129   : > { %p3520_p0 = scmp.eq.s32.totalorder %s3518_s24, 0  ;;  %p3119_p9 = por %p347_p7, %p77_p12 }
 0x12a   : > { %p3112_p4 = por %p341_p6, %p71_p1  ;;  %p2161_p5 = scmp.lt.s32.totalorder %s2732_s26, 2 }
 0x12b   : > { %p3108_p2 = por %p3520_p0, %p77_p12  ;;  %s485_s17 = sand.u32 1, %s2720_s23  }
 0x12c   : > { %s3522_s16 = scalar_select %p3112_p4, 1, 0 }
 0x12d   : > { %s3521_s29 = scalar_select %p3108_p2, 1, 0 }
 0x12e   : > { %s3117_s1 = scalar_select %p62_p13, %s2720_s23, %s64_s13  }
 0x12f   : > { %s3523_s0 = scalar_select %p3119_p9, 1, 0 }
 0x130   : > { %s1885_s20 = sshll.u32 %s2728_s25, 7  ;;  %s3126_s27 = sshll.u32 %s485_s17, 3 }
 0x131   : > { %s3524_s18 = sld [smem:[#allocation39_spill]]  ;;  %s489_s24 = scalar_lea.vmem [#allocation6], %s3126_s27 }
 0x132   : > { %s497_s28 = sshll.u32 %s489_s24, 4  ;;  %p3136_p10 = pnand %p2161_p5, %p3097_p11  ;;  %s3140_s28 = int_to_ptr.vmem [resolvable:$true] %s497_s28 }
 0x133   : > { %s3526_s14 = sld [smem:[#allocation40_spill]]  ;;  %s486_s4 = scalar_lea.sflag [#allocation7], %s485_s17 }
 0x134   : > { %p2564_p1 = pneg %p3136_p10 }
 0x137   : > { %s3131_s19 = scalar_lea.hbm %s3524_s18, %s1885_s20  ;;  %s2567_s6 = scalar_lea.hbm %s3524_s18, 256 }
 0x138   : > { %s2562_s5 = scalar_lea.hbm %s3131_s19, 128  ;;  %p2568_p12 = scmp.lt.u32.totalorder %s3131_s19, %s3524_s18 }
 0x139   : > { %s3145_s3 = scalar_lea.hbm %s3526_s14, %s1885_s20  ;;  %p2563_p8 = scmp.ne.s32.totalorder %s3131_s19, %s2562_s5 }
 0x13a   : > { %p2569_p6 = scmp.lt.u32.totalorder %s2567_s6, %s2562_s5  ;;  %p2571_p0 = scmp.lt.u32.totalorder %s2562_s5, %s3131_s19 }
 0x13b   : > { %p2565_p3 = pnand %p2564_p1, %p2563_p8 }
 0x13c   : > { %p2570_p13 = por %p2569_p6, %p2568_p12 }
 0x13d   : > { %p2566_p11 = pneg %p2565_p3 }
 0x13e   : > { %p2572_p7 = por %p2571_p0, %p2570_p13 }
 0x140   : > { %p2573_p5 = pnand %p2572_p7, %p2566_p11 }
 0x142   : > { %2576 = shalt.err (!%p2573_p5)
}
 0x143   : > { %s2577_s17 = scalar_lea.vmem %s3140_s28, 128  ;;  %s2746_s20 = smov [#allocation6]  }
 0x144   : > { %p2578_p8 = scmp.ne.s32.totalorder %s3140_s28, %s2577_s17  ;;  %s2582_s2 = sshll.u32 %s2746_s20, 4  ;;  %s2583_s2 = int_to_ptr.vmem [resolvable:$false] %s2582_s2 }
 0x145   : > { %s2584_s7 = scalar_lea.vmem %s2583_s2, 256  ;;  %p2585_p4 = scmp.lt.s32.totalorder %s3140_s28, %s2583_s2 }
 0x146   : > { %p2580_p3 = pnand %p2578_p8, %p2564_p1  ;;  %p2586_p12 = scmp.lt.s32.totalorder %s2584_s7, %s2577_s17 }
 0x148   : > { %p2581_p9 = pneg %p2580_p3  ;;  %p2587_p6 = por %p2586_p12, %p2585_p4 }
 0x14a   : > { %p2588_p13 = pnand %p2587_p6, %p2581_p9 }
 0x14c   : > { %2591 = shalt.err (!%p2588_p13)
}
 0x14d   : > { %2143 = dma.hbm_to_vmem [thread:$0]  (!%p3136_p10), %s3131_s19, 128, %s3140_s28, %s486_s4  }
 0x14e   : > { %s504_s5 = sand.u32 1, %s2732_s26   ;;  %s508_s6 = scalar_lea.vmem [#allocation9], %s3126_s27 }
 0x14f   : > { %s516_s8 = sshll.u32 %s508_s6, 4  ;;  %s505_s15 = scalar_lea.sflag [#allocation10], %s504_s5  ;;  %s517_s8 = int_to_ptr.vmem [resolvable:$true] %s516_s8 }
 0x150   : > { %s2592_s12 = scalar_lea.hbm %s3145_s3, 128  ;;  %s2597_s20 = scalar_lea.hbm %s3526_s14, 256 }
 0x151   : > { %p2593_p4 = scmp.ne.s32.totalorder %s3145_s3, %s2592_s12  ;;  %p2598_p0 = scmp.lt.u32.totalorder %s3145_s3, %s3526_s14 }
 0x152   : > { %p2599_p7 = scmp.lt.u32.totalorder %s2597_s20, %s2592_s12  ;;  %p2601_p8 = scmp.lt.u32.totalorder %s2592_s12, %s3145_s3 }
 0x153   : > { %p2595_p9 = pnand %p2593_p4, %p2564_p1 }
 0x154   : > { %p2600_p5 = por %p2599_p7, %p2598_p0 }
 0x155   : > { %p2596_p11 = pneg %p2595_p9 }
 0x156   : > { %p2602_p3 = por %p2601_p8, %p2600_p5 }
 0x158   : > { %p2603_p12 = pnand %p2602_p3, %p2596_p11 }
 0x15a   : > { %2606 = shalt.err (!%p2603_p12)
}
 0x15b   : > { %s2607_s4 = scalar_lea.vmem %s517_s8, 128  ;;  %s2747_s27 = smov [#allocation9]  }
 0x15c   : > { %p2608_p6 = scmp.ne.s32.totalorder %s517_s8, %s2607_s4  ;;  %s2612_s19 = sshll.u32 %s2747_s27, 4  ;;  %s2613_s19 = int_to_ptr.vmem [resolvable:$false] %s2612_s19 }
 0x15d   : > { %s2614_s28 = scalar_lea.vmem %s2613_s19, 256  ;;  %p2615_p9 = scmp.lt.s32.totalorder %s517_s8, %s2613_s19 }
 0x15e   : > { %p2610_p13 = pnand %p2608_p6, %p2564_p1  ;;  %p2616_p2 = scmp.lt.s32.totalorder %s2614_s28, %s2607_s4 }
 0x160   : > { %p2611_p4 = pneg %p2610_p13  ;;  %p2617_p0 = por %p2616_p2, %p2615_p9 }
 0x162   : > { %p2618_p7 = pnand %p2617_p0, %p2611_p4 }
 0x164   : > { %2621 = shalt.err (!%p2618_p7)
}
 0x165   : > { %2146 = dma.hbm_to_vmem [thread:$0]  (!%p3136_p10), %s3145_s3, 128, %s517_s8, %s505_s15  }
 0x166   : > { %s3527_s5 = sld [smem:[#allocation38_spill]] }
 0x16c   : > { %p3528_p11 = scmp.ne.s32.totalorder %s3527_s5, 0 }
 0x16d   : > { %s3196_s6 = sand.u32 (!%p3528_p11), 1, %s2716_s22   ;;  %p3529_p2 = scmp.ne.s32.totalorder (!%p3528_p11), %s3521_s29, 0 }
 0x16e   : > { %525 = sbr.rel (%p3528_p11) target bundleno = 1988 (0x7c4), region = 68  ;;  %s3199_s12 = sshll.u32 (!%p3528_p11), %s3196_s6, 3 }
 0x16f   : > { %s528_s24 = scalar_lea.sflag (!%p3528_p11), [#allocation7], %s3196_s6  ;;  %s531_s17 = scalar_lea.vmem (!%p3528_p11), [#allocation6], %s3199_s12 }
 0x175   : > { %2675 = dma.done.wait (%p3529_p2), %s528_s24, 128  }
 0x176   : > { %2677 = vsyncadd (%p3529_p2), %s528_s24, 4294967168  ;;  %s3530_s3 = sld [smem:[#allocation37_spill]]  ;;  %s540_s15 = scalar_lea.vmem [#allocation9], %s3199_s12 }
 0x17c   : > { %s536_s13 = sand.u32 1, %s3530_s3  }
 0x17d   : > { %s537_s8 = scalar_lea.sflag [#allocation10], %s536_s13 }
 0x17e   : > { %2679 = dma.done.wait (%p3529_p2), %s537_s8, 128  }
 0x17f   : > { %2681 = vsyncadd (%p3529_p2), %s537_s8, 4294967168  ;;  %p3531_p10 = scmp.eq.s32.totalorder %s3530_s3, 0 }
 0x181   : > { %2683 = dma.done.wait (%p3531_p10), [#allocation10], 256   ;;  %p3532_p1 = pmov %p3531_p10 }
 0x183   : > { %2685 = vsyncadd (%p3532_p1), [#allocation10], 4294967040  ;;  %p3533_p5 = pmov %p3532_p1 }
 0x184   : > { %p3534_p8 = pmov %p3532_p1 }
 0x185   : > { %2687 = dma.done.wait (%p3533_p5), [#allocation13], 272  }
 0x186   : > { %2689 = vsyncadd (%p3534_p8), [#allocation13], 4294967024  ;;  %p3535_p3 = pmov %p3532_p1 }
 0x187   : > { %p3536_p12 = pmov %p3532_p1 }
 0x188   : > { %2691 = dma.done.wait (%p3535_p3), [#allocation16], 272  }
 0x189   : > { %2693 = vsyncadd (%p3536_p12), [#allocation16], 4294967024  ;;  %p3537_p6 = pmov %p3532_p1 }
 0x18a   : > { %p3538_p13 = pmov %p3532_p1 }
 0x18b   : > { %2695 = dma.done.wait (%p3537_p6), [#allocation19], 272  }
 0x18c   : > { %2697 = vsyncadd (%p3538_p13), [#allocation19], 4294967024  ;;  %p3539_p4 = pmov %p3532_p1 }
 0x18d   : > { %p3540_p9 = pmov %p3532_p1 }
 0x18e   : > { %2699 = dma.done.wait (%p3539_p4), [#allocation22], 32  }
 0x18f   : > { %2701 = vsyncadd (%p3540_p9), [#allocation22], 4294967264  ;;  %p3541_p0 = pmov %p3532_p1 }
 0x191   : > { %2703 = dma.done.wait (%p3541_p0), [#allocation25], 16   ;;  %p3542_p7 = pmov %p3541_p0 }
 0x192   : > { %v2748_v0 = vmov 0.0   ;;  %vm2749_vm0 = vmmov 0   ;;  %v2255_v1 = vld [vmem:[#allocation11] sm:$0xff]   ;;  %v2256_v2 = vld [vmem:[#allocation14] sm:$0xff]   ;;  %v2257_v3 = vld [vmem:[#allocation11 + $0x8] sm:$0xff]   ;;  %vm656_vm1 = vcmask 261120  }
 0x193   : > { %2705 = vsyncadd (%p3542_p7), [#allocation25], 4294967280  ;;  %1967 = vmatprep.subr.bf16.mxu0 %v2748_v0  ;;  %1975 = vmatprep.subr.bf16.mxu1 %v2748_v0  ;;  %v2258_v4 = vld [vmem:[#allocation14 + $0x8] sm:$0xff]   ;;  %vm707_vm2 = vcmask 64512   ;;  %v1902_v9 = vld [vmem:[#allocation12] ss:$0 sm:$0xff] }
 0x194   : > { %1971 = vmatprep.mubr.msk.bf16.mxu0 %vm2749_vm0, %v2748_v0  ;;  %1979 = vmatprep.mubr.msk.bf16.mxu1 %vm2749_vm0, %v2748_v0  ;;  %v3247_v5 = vld [vmem:[%s531_s17] sm:$0xff]  ;;  %v712_v6 = vld [vmem:[%s540_s15] sm:$0xff]  ;;  %708 = vst.msk [vmem:[#allocation3] sm:$0xff] %vm707_vm2, %v2748_v0  ;;  %709 = vst.msk [vmem:[#allocation3 + $0x8] sm:$0xff] %vm707_vm2, %v2748_v0  ;;  %vm702_vm3 = vcmask 257024   ;;  %s2750_s29 = smov 112  }
 0x195   : > { %1968 = vmatpush3.bf16.msra.mxu0 %v2255_v1  ;;  %1976 = vmatpush3.bf16.msra.mxu1 %v2256_v2  ;;  %v632_v7 = vpack.c.bf16 %v3247_v5, %v3247_v5  ;;  %v713_v8 = vpack.c.bf16 %v712_v6, %v712_v6  ;;  %710 = vst.msk [vmem:[#allocation3 + $0x10] sm:$0xff] %vm707_vm2, %v2748_v0  ;;  %711 = vst.msk [vmem:[#allocation3 + $0x18] sm:$0xff] %vm707_vm2, %v2748_v0  ;;  %v1906_v10 = vld [vmem:[#allocation15] ss:$0 sm:$0xff]  ;;  %s2751_s20 = smov 120   ;;  %s2752_s2 = smov 104  }
 0x196   : > { %1969 = vmatprep.subr.bf16.mxu0 %v2748_v0  ;;  %1977 = vmatprep.subr.bf16.mxu1 %v2748_v0  ;;  %v2260_v27 = vld [vmem:[#allocation17] sm:$0xff]   ;;  %v2261_v28 = vld [vmem:[#allocation17 + $0x8] sm:$0xff]   ;;  %vm704_vm4 = vcmask 31744   ;;  %v2753_v43 = vmov -inf   ;;  %v2754_v44 = vmov 0   ;;  %v2755_v60 = vmov 1  }
 0x197   : > { %705 = vst.msk [vmem:[#allocation4] sm:$0xff] %vm704_vm4, %v2753_v43  ;;  %706 = vst.msk [vmem:[#allocation5] sm:$0xff] %vm704_vm4, %v2748_v0  ;;  %2243 = vset.pattern.permute.xlu1 %v2754_v44  ;;  %2244 = vset.pattern.permute.xlu0 %v2755_v60  ;;  %vm916_vm5 = vcmask 7168   ;;  %v2756_v2 = vmov 2   ;;  %vm929_vm6 = vcmask 1043456   ;;  %vm1052_vm7 = vcmask 15368  }
 0x198   : > { %vm1187_vm8 = vcmask 23568   ;;  %vm1321_vm9 = vcmask 31768   ;;  %s3543_s7 = sld [smem:[#allocation36_spill]]  ;;  %s625_s27 = scalar_lea.vmem [#allocation26], %s3199_s12 }
 0x199   : > { %1970 = vmatpush3.bf16.msra.mxu0 %v2257_v3  ;;  %1978 = vmatpush3.bf16.msra.mxu1 %v2258_v4  ;;  %v1910_v3 = vld [vmem:[#allocation18] ss:$0 sm:$0xff]  ;;  %s1668_s19 = sshll.u32 %s625_s27, 4  ;;  %s3544_s24 = sld [smem:[#allocation48_spill]]  ;;  %s3420_s19 = int_to_ptr.vmem [resolvable:$true] %s1668_s19 }
 0x19a   : > { %1983 = vmatprep.subr.bf16.mxu0 %v2748_v0  ;;  %1991 = vmatprep.subr.bf16.mxu1 %v2748_v0  ;;  %s1654_s13 = scalar_lea.sflag [#allocation8], %s3196_s6  ;;  %s2622_s8 = scalar_lea.vmem %s3420_s19, 128 }
 0x19b   : > { %p2623_p11 = scmp.ne.s32.totalorder %s3420_s19, %s2622_s8  ;;  %p3546_p2 = scmp.ne.s32.totalorder %s3522_s16, 0 }
 0x19c   : > { %1972 = vmatmul.mubr.msk.bf16.vlgmr.msra.gmra.mrb[0].mxu0 %vm656_vm1, %v632_v7  ;;  %1980 = vmatmul.mubr.msk.bf16.vlgmr.msra.gmra.mrb[0].mxu1 %vm656_vm1, %v713_v8  ;;  %s2758_s12 = smov [#allocation26]  }
 0x19d   : > { %1987 = vmatprep.mubr.msk.bf16.mxu0 %vm2749_vm0, %v2748_v0  ;;  %1993 = vmatprep.mubr.msk.bf16.mxu1 %vm2749_vm0, %v2748_v0  ;;  %p2624_p10 = pnand %p2623_p11, %p3546_p2  ;;  %s2626_s15 = sshll.u32 %s2758_s12, 4  ;;  %s2627_s15 = int_to_ptr.vmem [resolvable:$false] %s2626_s15 }
 0x19e   : > { %1984 = vmatpush3.bf16.msra.mxu0 %v2260_v27  ;;  %v3319_v61 = vld [vmem:[#allocation4] sm:$0xff]  ;;  %s1931_s4 = sshll.u32 %s3543_s7, 7  ;;  %p2629_p5 = scmp.lt.s32.totalorder %s3420_s19, %s2627_s15 }
 0x19f   : > { %1985 = vmatprep.subr.bf16.mxu0 %v2748_v0  ;;  %s3545_s17 = smov %s3544_s24  ;;  %s3418_s3 = scalar_lea.hbm %s3544_s24, %s1931_s4 }
 0x1a0   : > { %p2625_p1 = pneg %p2624_p10 }
 0x1a2   : > { %1986 = vmatpush3.bf16.msra.mxu0 %v2261_v28 }
 0x1a3   : > { %1997 = vmatprep.subr.bf16.mxu0 %v2748_v0 }
 0x1a5   : > { %1988 = vmatmul.mubr.msk.bf16.vlgmr.msra.gmra.mrb[4].mxu0 %vm656_vm1, %v713_v8 }
 0x1a6   : > { %1999 = vmatprep.mubr.msk.bf16.mxu0 %vm2749_vm0, %v2748_v0 }
 0x26f   : > { %v694_v11 = vpop.f32.mrb[0].mxu0  ;;  %v775_v13 = vpop.f32.mrb[0].mxu1 }
 0x270   : > { %v695_v12 = vadd.f32 %v1902_v9, %v694_v11  ;;  %v1973_v14 = vpop.f32.mrb[1].mxu0  ;;  %v776_v15 = vadd.f32 %v1906_v10, %v775_v13  ;;  %v1981_v16 = vpop.f32.mrb[1].mxu1 }
 0x271   : > { %v697_v17 = vpop.f32.mrb[2].mxu0  ;;  %v778_v19 = vpop.f32.mrb[2].mxu1 }
 0x272   : > { %v700_v18 = vmul.f32 0.35355338, %v695_v12  ;;  %v1974_v20 = vpop.f32.mrb[3].mxu0  ;;  %v781_v21 = vpack.c.bf16 %v776_v15, %v776_v15  ;;  %v1982_v22 = vpop.f32.mrb[3].mxu1 }
 0x274   : > { %v701_v23 = vpack.c.bf16 %v700_v18, %v700_v18  ;;  %1117 = vrot.lane.b32.xlu1 %v781_v21, %s2750_s29  ;;  %982 = vrot.lane.b32.xlu0 %v781_v21, %s2751_s20  ;;  %v852_v24 = vsel %vm707_vm2, %v781_v21, 0 }
 0x275   : > { %1992 = vmatpush3.bf16.xpose.msra.mxu1 %v852_v24 }
 0x276   : > { %703 = vst.msk [vmem:[#allocation2] sm:$0xf] %vm702_vm3, %v701_v23  ;;  %2003 = vmatprep.subr.bf16.mxu1 %v2748_v0  ;;  %v2757_v23 = vmov 3  }
 0x278   : > { %v839_v4 = vpop.f32.mrb[4].mxu0 }
 0x279   : > { %v840_v6 = vadd.f32 %v1910_v3, %v839_v4  ;;  %v1989_v7 = vpop.f32.mrb[5].mxu0 }
 0x27a   : > { %v842_v8 = vpop.f32.mrb[6].mxu0 }
 0x27b   : > { %v845_v9 = vpack.c.bf16 %v840_v6, %v840_v6  ;;  %v1990_v10 = vpop.f32.mrb[7].mxu0 }
 0x27d   : > { %v846_v25 = vld [vmem:[#allocation2] sm:$0xf]  ;;  %v931_v11 = vsel %vm929_vm6, %v845_v9, 0 }
 0x27e   : > { %1994 = vmatmul.mubr.msk.bf16.vlgmr.msra.gmra.mrb[4].mxu1 %vm707_vm2, %v846_v25  ;;  %v1916_v26 = vcombine.low %v846_v25, %v846_v25  ;;  %1998 = vmatpush3.bf16.msra.mxu0 %v931_v11 }
 0x27f   : > { %2005 = vmatprep.mubr.msk.bf16.mxu1 %vm2749_vm0, %v2748_v0  ;;  %2009 = vmatprep.subr.bf16.mxu0 %v2748_v0 }
 0x280   : > { %1115 = vrot.lane.b32.xlu1 %v1916_v26, %s2750_s29  ;;  %979 = vrot.lane.b32.xlu0 %v1916_v26, %s2751_s20 }
 0x284   : > { %1249 = vrot.lane.b32.xlu1 %v1916_v26, %s2752_s2  ;;  %1251 = vrot.lane.b32.xlu0 %v781_v21, %s2752_s2 }
 0x2e6   : > { %v983_v29 = vpop.permute.xlu0 %982  ;;  %v1118_v31 = vpop.permute.xlu1 %1117 }
 0x2e7   : > { %v988_v30 = vsel %vm707_vm2, %v983_v29, 0  ;;  %v1123_v33 = vsel %vm707_vm2, %v1118_v31, 0 }
 0x2e8   : > { %2004 = vmatpush3.bf16.xpose.msra.mxu1 %v988_v30 }
 0x2e9   : > { %2015 = vmatprep.subr.bf16.mxu1 %v2748_v0 }
 0x2f2   : > { %v980_v32 = vpop.permute.xlu0 %979  ;;  %v1116_v35 = vpop.permute.xlu1 %1115 }
 0x2f3   : > { %2006 = vmatmul.mubr.msk.bf16.vlgmr.msra.gmra.mrb[8].mxu1 %vm707_vm2, %v980_v32 }
 0x2f4   : > { %2016 = vmatpush3.bf16.xpose.msra.mxu1 %v1123_v33  ;;  %2017 = vmatprep.mubr.msk.bf16.mxu1 %vm2749_vm0, %v2748_v0 }
 0x2f5   : > { %2027 = vmatprep.subr.bf16.mxu1 %v2748_v0 }
 0x2f6   : > { %v1252_v34 = vpop.permute.xlu0 %1251  ;;  %v1250_v37 = vpop.permute.xlu1 %1249 }
 0x2f7   : > { %v1257_v36 = vsel %vm707_vm2, %v1252_v34, 0 }
 0x2fb   : > { %2018 = vmatmul.mubr.msk.bf16.vlgmr.msra.gmra.mrb[12].mxu1 %vm707_vm2, %v1116_v35 }
 0x2fc   : > { %2028 = vmatpush3.bf16.xpose.msra.mxu1 %v1257_v36  ;;  %2029 = vmatprep.mubr.msk.bf16.mxu1 %vm2749_vm0, %v2748_v0 }
 0x2fd   : > { %2039 = vmatprep.subr.bf16.mxu1 %v2748_v0 }
 0x303   : > { %2030 = vmatmul.mubr.msk.bf16.vlgmr.msra.gmra.mrb[16].mxu1 %vm707_vm2, %v1250_v37 }
 0x304   : > { %2041 = vmatprep.mubr.msk.bf16.mxu1 %vm2749_vm0, %v2748_v0 }
 0x351   : > { %v3300_v38 = vpop.f32.mrb[4].mxu1 }
 0x352   : > { %v1995_v39 = vpop.f32.mrb[5].mxu1  ;;  %v895_v40 = vsel %vm707_vm2, %v3300_v38, -inf }
 0x353   : > { %896 = vmax.xlane.f32.xlu0 %v895_v40  ;;  %v891_v41 = vpop.f32.mrb[6].mxu1 }
 0x354   : > { %v1996_v42 = vpop.f32.mrb[7].mxu1 }
 0x3c6   : > { %v3306_v45 = vpop.f32.mrb[8].mxu1 }
 0x3c7   : > { %v2007_v46 = vpop.f32.mrb[9].mxu1  ;;  %v1031_v47 = vsel %vm707_vm2, %v3306_v45, -inf }
 0x3c8   : > { %1032 = vmax.xlane.f32.xlu1 %v1031_v47  ;;  %v1027_v48 = vpop.f32.mrb[10].mxu1 }
 0x3c9   : > { %v2008_v49 = vpop.f32.mrb[11].mxu1 }
 0x3ce   : > { %v3310_v50 = vpop.f32.mrb[12].mxu1 }
 0x3cf   : > { %v2019_v51 = vpop.f32.mrb[13].mxu1  ;;  %v1166_v52 = vsel %vm707_vm2, %v3310_v50, -inf }
 0x3d0   : > { %1167 = vmax.xlane.f32.xlu0 %v1166_v52  ;;  %v1162_v53 = vpop.f32.mrb[14].mxu1 }
 0x3d1   : > { %v2020_v54 = vpop.f32.mrb[15].mxu1 }
 0x3d6   : > { %v3314_v55 = vpop.f32.mrb[16].mxu1 }
 0x3d7   : > { %v2031_v56 = vpop.f32.mrb[17].mxu1  ;;  %v1300_v57 = vsel %vm707_vm2, %v3314_v55, -inf }
 0x3d8   : > { %1301 = vmax.xlane.f32.xlu0 %v1300_v57  ;;  %v1296_v58 = vpop.f32.mrb[18].mxu1 }
 0x3d9   : > { %v2032_v59 = vpop.f32.mrb[19].mxu1 }
 0x3e0   : > { %v897_v62 = vpop.xlane.xlu0 %896 }
 0x3e1   : > { %v3322_v63 = vmax.f32 %v3319_v61, %v897_v62 }
 0x3e3   : > { %v899_v1 = vsub.f32 %v3319_v61, %v3322_v63  ;;  %975 = vst.msk [vmem:[#allocation4] sm:$0xff] %vm916_vm5, %v3322_v63  ;;  %904 = vperm.xlu1 %2243, %v3322_v63  }
 0x3e5   : > { %v900_v58 = vmul.f32 1.442695, %v899_v1  ;;  %v910_v1 = vld [vmem:[#allocation5] sm:$0xff] }
 0x3e7   : > { %2245 = vset.pattern.permute.xlu1 %v2756_v2 }
 0x3ea   : > { %v1030_v12 = vld [vmem:[#allocation4] sm:$0xff] }
 0x455   : > { %v1033_v13 = vpop.xlane.xlu1 %1032 }
 0x456   : > { %v1034_v14 = vmax.f32 %v1030_v12, %v1033_v13 }
 0x458   : > { %v1035_v15 = vsub.f32 %v1030_v12, %v1034_v14  ;;  %1114 = vst.msk [vmem:[#allocation4] sm:$0xff] %vm1052_vm7, %v1034_v14  ;;  %1040 = vperm.xlu0 %2244, %v1034_v14   ;;  %v1405_v12 = vld [vmem:[#allocation20 + $0x4] sm:$0xf] }
 0x459   : > { %v1410_v13 = vsel %vm929_vm6, %v1405_v12, 0 }
 0x45a   : > { %v1036_v42 = vmul.f32 1.442695, %v1035_v15  ;;  %2040 = vmatpush3.bf16.msra.mxu1 %v1410_v13 }
 0x45b   : > { %2051 = vmatprep.subr.bf16.mxu1 %v2748_v0 }
 0x45d   : > { %v1168_v17 = vpop.xlane.xlu0 %1167 }
 0x45f   : > { %v3333_v16 = vld [vmem:[#allocation4] sm:$0xff] }
 0x460   : > { %v3336_v18 = vmax.f32 %v3333_v16, %v1168_v17 }
 0x462   : > { %v1170_v19 = vsub.f32 %v3333_v16, %v3336_v18  ;;  %1248 = vst.msk [vmem:[#allocation4] sm:$0xff] %vm1187_vm8, %v3336_v18  ;;  %v905_v20 = vpop.permute.xlu1 %904  ;;  %1175 = vperm.xlu1 %2245, %v3336_v18  }
 0x463   : > { %v907_v21 = vsub.f32 %v3300_v38, %v905_v20 }
 0x464   : > { %v1171_v3 = vmul.f32 1.442695, %v1170_v19 }
 0x465   : > { %v908_v22 = vmul.f32 1.442695, %v907_v21  ;;  %v1302_v25 = vpop.xlane.xlu0 %1301 }
 0x466   : > { %2246 = vset.pattern.permute.xlu1 %v2757_v23 }
 0x467   : > { %2262 = vpow2.f32 %v908_v22  ;;  %v918_v22 = vld [vmem:[#allocation3] sm:$0xff] }
 0x469   : > { %v1299_v24 = vld [vmem:[#allocation4] sm:$0xff] }
 0x46a   : > { %v1303_v26 = vmax.f32 %v1299_v24, %v1302_v25 }
 0x46c   : > { %v1304_v27 = vsub.f32 %v1299_v24, %v1303_v26  ;;  %1382 = vst.msk [vmem:[#allocation4] sm:$0xff] %vm1321_vm9, %v1303_v26  ;;  %1309 = vperm.xlu1 %2246, %v1303_v26  }
 0x470   : > { %1064 = vrot.lane.b32.xlu1 %v845_v9, %s2751_s20 }
 0x471   : > { %v2263_v28 = vpop.eup %2262  ;;  %2247 = vset.pattern.permute.xlu1 %v2754_v44 }
 0x472   : > { %v925_v29 = vpack.c.bf16 %v2263_v28, %v2263_v28  ;;  %v912_v30 = vsel %vm707_vm2, %v2263_v28, 0.0 }
 0x474   : > { %1198 = vrot.lane.b32.xlu1 %v845_v9, %s2750_s29  ;;  %2000 = vmatmul.mubr.msk.bf16.vlgmr.msra.gmra.mrb[8].mxu0 %vm707_vm2, %v925_v29  ;;  %s2628_s29 = scalar_lea.vmem %s2627_s15, 256 }
 0x475   : > { %2011 = vmatprep.mubr.msk.bf16.mxu0 %vm2749_vm0, %v2748_v0  ;;  %p2630_p8 = scmp.lt.s32.totalorder %s2628_s29, %s2622_s8 }
 0x477   : > { %p2631_p3 = por %p2630_p8, %p2629_p5 }
 0x478   : > { %1332 = vrot.lane.b32.xlu1 %v845_v9, %s2752_s2 }
 0x479   : > { %p2632_p12 = pnand %p2631_p3, %p2625_p1 }
 0x49c   : > { %913 = vadd.xlane.f32.xlu1 %v912_v30 }
 0x4d7   : > { %v1041_v31 = vpop.permute.xlu0 %1040 }
 0x4d8   : > { %v1043_v32 = vsub.f32 %v3306_v45, %v1041_v31  ;;  %v1396_v31 = vld [vmem:[#allocation20] sm:$0xf] }
 0x4da   : > { %v1044_v33 = vmul.f32 1.442695, %v1043_v32  ;;  %v1456_v32 = vsel %vm929_vm6, %v1396_v31, 0 }
 0x4dc   : > { %2264 = vpow2.f32 %v1044_v33  ;;  %v1055_v33 = vld [vmem:[#allocation3 + $0x8] sm:$0xff] }
 0x4e1   : > { %v1176_v34 = vpop.permute.xlu1 %1175 }
 0x4e2   : > { %v1178_v35 = vsub.f32 %v3310_v50, %v1176_v34  ;;  %v1305_v50 = vmul.f32 1.442695, %v1304_v27 }
 0x4e4   : > { %v1179_v36 = vmul.f32 1.442695, %v1178_v35 }
 0x4e6   : > { %v2265_v37 = vpop.eup %2264  ;;  %2266 = vpow2.f32 %v1179_v36 }
 0x4e7   : > { %v1048_v38 = vsel %vm707_vm2, %v2265_v37, 0.0  ;;  %v1062_v48 = vpack.c.bf16 %v2265_v37, %v2265_v37 }
 0x4e8   : > { %1049 = vadd.xlane.f32.xlu0 %v1048_v38 }
 0x4eb   : > { %v1310_v39 = vpop.permute.xlu1 %1309 }
 0x4ec   : > { %v1312_v40 = vsub.f32 %v3314_v55, %v1310_v39 }
 0x4ee   : > { %v1313_v41 = vmul.f32 1.442695, %v1312_v40 }
 0x4ef   : > { %v1065_v43 = vpop.permute.xlu1 %1064 }
 0x4f0   : > { %v2267_v46 = vpop.eup %2266  ;;  %2268 = vpow2.f32 %v1313_v41  ;;  %v1070_v45 = vsel %vm929_vm6, %v1065_v43, 0 }
 0x4f1   : > { %2010 = vmatpush3.bf16.msra.mxu0 %v1070_v45  ;;  %v1183_v47 = vsel %vm707_vm2, %v2267_v46, 0.0  ;;  %2270 = vpow2.f32 %v1036_v42  ;;  %v1197_v54 = vpack.c.bf16 %v2267_v46, %v2267_v46 }
 0x4f2   : > { %1184 = vadd.xlane.f32.xlu1 %v1183_v47  ;;  %2021 = vmatprep.subr.bf16.mxu0 %v2748_v0  ;;  %2272 = vpow2.f32 %v1305_v50 }
 0x4f3   : > { %v1199_v49 = vpop.permute.xlu1 %1198  ;;  %2274 = vpow2.f32 %v900_v58  ;;  %v1506_v58 = vld [vmem:[#allocation20 + $0x8] sm:$0xf] }
 0x4f4   : > { %2012 = vmatmul.mubr.msk.bf16.vlgmr.msra.gmra.mrb[12].mxu0 %vm707_vm2, %v1062_v48  ;;  %v1204_v51 = vsel %vm929_vm6, %v1199_v49, 0  ;;  %2276 = vpow2.f32 %v1171_v3  ;;  %v1324_v48 = vld [vmem:[#allocation3 + $0x18] sm:$0xff]  ;;  %v1511_v3 = vsel %vm929_vm6, %v1506_v58, 0 }
 0x4f5   : > { %2022 = vmatpush3.bf16.msra.mxu0 %v1204_v51  ;;  %2023 = vmatprep.mubr.msk.bf16.mxu0 %vm2749_vm0, %v2748_v0 }
 0x4f6   : > { %2033 = vmatprep.subr.bf16.mxu0 %v2748_v0 }
 0x4f7   : > { %v1333_v52 = vpop.permute.xlu1 %1332 }
 0x4f8   : > { %v1338_v55 = vsel %vm929_vm6, %v1333_v52, 0 }
 0x4fa   : > { %v2269_v53 = vpop.eup %2268 }
 0x4fb   : > { %v1317_v56 = vsel %vm707_vm2, %v2269_v53, 0.0  ;;  %v2271_v57 = vpop.eup %2270  ;;  %v1331_v62 = vpack.c.bf16 %v2269_v53, %v2269_v53 }
 0x4fc   : > { %1318 = vadd.xlane.f32.xlu1 %v1317_v56  ;;  %2024 = vmatmul.mubr.msk.bf16.vlgmr.msra.gmra.mrb[16].mxu0 %vm707_vm2, %v1197_v54  ;;  %v2273_v59 = vpop.eup %2272 }
 0x4fd   : > { %2034 = vmatpush3.bf16.msra.mxu0 %v1338_v55  ;;  %2035 = vmatprep.mubr.msk.bf16.mxu0 %vm2749_vm0, %v2748_v0  ;;  %v2275_v61 = vpop.eup %2274 }
 0x4fe   : > { %1058 = vperm.xlu0 %2244, %v2271_v57   ;;  %2045 = vmatprep.subr.bf16.mxu0 %v2748_v0  ;;  %v2277_v63 = vpop.eup %2276  ;;  %v911_v4 = vmul.f32 %v2275_v61, %v910_v1 }
 0x502   : > { %2249 = vset.pattern.permute.xlu0 %v2757_v23 }
 0x503   : > { %1327 = vperm.xlu0 %2249, %v2273_v59  }
 0x504   : > { %2036 = vmatmul.mubr.msk.bf16.vlgmr.msra.gmra.mrb[20].mxu0 %vm707_vm2, %v1331_v62 }
 0x505   : > { %2047 = vmatprep.mubr.msk.bf16.mxu0 %vm2749_vm0, %v2748_v0  ;;  %2046 = vmatpush3.bf16.msra.mxu0 %v1456_v32 }
 0x506   : > { %2057 = vmatprep.subr.bf16.mxu0 %v2748_v0 }
 0x507   : > { %2252 = vset.pattern.permute.xlu0 %v2756_v2 }
 0x50d   : > { %921 = vperm.xlu1 %2247, %v2275_v61  }
 0x511   : > { %2248 = vset.pattern.permute.xlu1 %v2756_v2 }
 0x512   : > { %1193 = vperm.xlu1 %2248, %v2277_v63  }
 0x516   : > { %2250 = vset.pattern.permute.xlu1 %v2755_v60 }
 0x529   : > { %v914_v6 = vpop.xlane.xlu1 %913 }
 0x52a   : > { %v915_v7 = vadd.f32 %v914_v6, %v911_v4  ;;  %v1562_v4 = vld [vmem:[#allocation20 + $0xc] sm:$0xf] }
 0x52c   : > { %917 = vst.msk [vmem:[#allocation5] sm:$0xff] %vm916_vm5, %v915_v7 }
 0x533   : > { %v1046_v2 = vld [vmem:[#allocation5] sm:$0xff] }
 0x534   : > { %v1047_v14 = vmul.f32 %v2271_v57, %v1046_v2 }
 0x547   : > { %v967_v8 = vpop.f32.mrb[8].mxu0 }
 0x548   : > { %v2001_v9 = vpop.f32.mrb[9].mxu0 }
 0x549   : > { %v970_v10 = vpop.f32.mrb[10].mxu0 }
 0x54a   : > { %v2002_v11 = vpop.f32.mrb[11].mxu0  ;;  %v1567_v10 = vsel %vm929_vm6, %v1562_v4, 0 }
 0x575   : > { %v1050_v15 = vpop.xlane.xlu0 %1049 }
 0x576   : > { %v1051_v60 = vadd.f32 %v1050_v15, %v1047_v14 }
 0x578   : > { %1053 = vst.msk [vmem:[#allocation5] sm:$0xff] %vm1052_vm7, %v1051_v60 }
 0x57d   : > { %v1059_v34 = vpop.permute.xlu0 %1058 }
 0x57e   : > { %v1061_v35 = vmul.f32 %v1059_v34, %v1055_v33 }
 0x57f   : > { %v1181_v16 = vld [vmem:[#allocation5] sm:$0xff]  ;;  %v1185_v18 = vpop.xlane.xlu1 %1184 }
 0x580   : > { %v1182_v17 = vmul.f32 %v2277_v63, %v1181_v16 }
 0x582   : > { %v1186_v19 = vadd.f32 %v1185_v18, %v1182_v17  ;;  %v1328_v49 = vpop.permute.xlu0 %1327 }
 0x583   : > { %v1330_v50 = vmul.f32 %v1328_v49, %v1324_v48  ;;  %v1929_v48 = vld [vmem:[#allocation24] ss:$0 sm:$0xff] }
 0x584   : > { %1188 = vst.msk [vmem:[#allocation5] sm:$0xff] %vm1187_vm8, %v1186_v19 }
 0x589   : > { %v1319_v20 = vpop.xlane.xlu1 %1318 }
 0x58b   : > { %v1315_v21 = vld [vmem:[#allocation5] sm:$0xff] }
 0x58c   : > { %v1316_v24 = vmul.f32 %v2273_v59, %v1315_v21 }
 0x58d   : > { %v922_v25 = vpop.permute.xlu1 %921 }
 0x58e   : > { %v1320_v26 = vadd.f32 %v1319_v20, %v1316_v24  ;;  %v924_v27 = vmul.f32 %v922_v25, %v918_v22 }
 0x590   : > { %1322 = vst.msk [vmem:[#allocation5] sm:$0xff] %vm1321_vm9, %v1320_v26  ;;  %v973_v28 = vadd.f32 %v967_v8, %v924_v27 }
 0x591   : > { %v1194_v41 = vpop.permute.xlu1 %1193 }
 0x592   : > { %974 = vst.msk [vmem:[#allocation3] sm:$0xff] %vm707_vm2, %v973_v28 }
 0x597   : > { %v1386_v29 = vld [vmem:[#allocation5] sm:$0xff] }
 0x598   : > { %2278 = vrcp.f32 %v1386_v29  ;;  %v1927_v29 = vld [vmem:[#allocation21] ss:$0 sm:$0xff] }
 0x599   : > { %v1388_v1 = vld [vmem:[#allocation3] sm:$0xff] }
 0x5a2   : > { %v2279_v30 = vpop.eup %2278 }
 0x5a3   : > { %1500 = vperm.xlu0 %2252, %v2279_v30   ;;  %1399 = vperm.xlu1 %2250, %v2279_v30  }
 0x5a7   : > { %2251 = vset.pattern.permute.xlu1 %v2754_v44  ;;  %2254 = vset.pattern.permute.xlu0 %v2757_v23  ;;  %v1190_v44 = vld [vmem:[#allocation3 + $0x10] sm:$0xff] }
 0x5a8   : > { %1391 = vperm.xlu1 %2251, %v2279_v30   ;;  %v1196_v42 = vmul.f32 %v1194_v41, %v1190_v44 }
 0x5ac   : > { %2253 = vset.pattern.permute.xlu1 %v2757_v23 }
 0x5ad   : > { %1556 = vperm.xlu1 %2253, %v2279_v30  }
 0x5c7   : > { %v1106_v36 = vpop.f32.mrb[12].mxu0 }
 0x5c8   : > { %v1112_v37 = vadd.f32 %v1106_v36, %v1061_v35  ;;  %v2013_v38 = vpop.f32.mrb[13].mxu0 }
 0x5c9   : > { %v1109_v39 = vpop.f32.mrb[14].mxu0 }
 0x5ca   : > { %1113 = vst.msk [vmem:[#allocation3 + $0x8] sm:$0xff] %vm707_vm2, %v1112_v37  ;;  %v2014_v40 = vpop.f32.mrb[15].mxu0 }
 0x5cf   : > { %v1240_v43 = vpop.f32.mrb[16].mxu0 }
 0x5d0   : > { %v1246_v46 = vadd.f32 %v1240_v43, %v1196_v42  ;;  %v2025_v45 = vpop.f32.mrb[17].mxu0 }
 0x5d1   : > { %v1243_v47 = vpop.f32.mrb[18].mxu0  ;;  %v1397_v57 = vld [vmem:[#allocation3 + $0x8] sm:$0xff] }
 0x5d2   : > { %1247 = vst.msk [vmem:[#allocation3 + $0x10] sm:$0xff] %vm707_vm2, %v1246_v46  ;;  %v2026_v23 = vpop.f32.mrb[19].mxu0  ;;  %v1928_v47 = vld [vmem:[#allocation23] ss:$0 sm:$0xff] }
 0x5d7   : > { %v1374_v51 = vpop.f32.mrb[20].mxu0 }
 0x5d8   : > { %v1380_v52 = vadd.f32 %v1374_v51, %v1330_v50  ;;  %v2037_v53 = vpop.f32.mrb[21].mxu0 }
 0x5d9   : > { %v1377_v54 = vpop.f32.mrb[22].mxu0  ;;  %v1498_v6 = vld [vmem:[#allocation3 + $0x10] sm:$0xff] }
 0x5da   : > { %1381 = vst.msk [vmem:[#allocation3 + $0x18] sm:$0xff] %vm707_vm2, %v1380_v52  ;;  %v2038_v55 = vpop.f32.mrb[23].mxu0 }
 0x5e1   : > { %v1554_v13 = vld [vmem:[#allocation3 + $0x18] sm:$0xff] }
 0x622   : > { %v1400_v56 = vpop.permute.xlu1 %1399  ;;  %v1501_v61 = vpop.permute.xlu0 %1500 }
 0x623   : > { %v1402_v59 = vmul.f32 %v1400_v56, %v1397_v57  ;;  %v1503_v8 = vmul.f32 %v1501_v61, %v1498_v6 }
 0x625   : > { %v1403_v62 = vpack.c.bf16 %v1402_v59, %v1402_v59  ;;  %v1504_v12 = vpack.c.bf16 %v1503_v8, %v1503_v8 }
 0x627   : > { %v1392_v63 = vpop.permute.xlu1 %1391  ;;  %2042 = vmatmul.mubr.msk.bf16.vlgmr.msra.gmra.mrb[20].mxu1 %vm707_vm2, %v1403_v62 }
 0x628   : > { %v1394_v7 = vmul.f32 %v1392_v63, %v1388_v1  ;;  %2052 = vmatpush3.bf16.msra.mxu1 %v1511_v3  ;;  %2053 = vmatprep.mubr.msk.bf16.mxu1 %vm2749_vm0, %v2748_v0 }
 0x62a   : > { %v1395_v9 = vpack.c.bf16 %v1394_v7, %v1394_v7 }
 0x62c   : > { %v1557_v11 = vpop.permute.xlu1 %1556  ;;  %2048 = vmatmul.mubr.msk.bf16.vlgmr.msra.gmra.mrb[24].mxu0 %vm707_vm2, %v1395_v9 }
 0x62d   : > { %2058 = vmatpush3.bf16.msra.mxu0 %v1567_v10  ;;  %2059 = vmatprep.mubr.msk.bf16.mxu0 %vm2749_vm0, %v2748_v0  ;;  %v1559_v2 = vmul.f32 %v1557_v11, %v1554_v13 }
 0x62f   : > { %2054 = vmatmul.mubr.msk.bf16.vlgmr.msra.gmra.mrb[24].mxu1 %vm707_vm2, %v1504_v12  ;;  %v1560_v14 = vpack.c.bf16 %v1559_v2, %v1559_v2 }
 0x634   : > { %2060 = vmatmul.mubr.msk.bf16.vlgmr.msra.gmra.mrb[28].mxu0 %vm707_vm2, %v1560_v14 }
 0x6fa   : > { %v1446_v15 = vpop.f32.mrb[20].mxu1 }
 0x6fb   : > { %v2043_v60 = vpop.f32.mrb[21].mxu1 }
 0x6fc   : > { %v1449_v16 = vpop.f32.mrb[22].mxu1 }
 0x6fd   : > { %v2044_v17 = vpop.f32.mrb[23].mxu1 }
 0x6ff   : > { %v1492_v18 = vpop.f32.mrb[24].mxu0 }
 0x700   : > { %v1493_v19 = vadd.f32 %v1492_v18, %v1446_v15  ;;  %v2049_v20 = vpop.f32.mrb[25].mxu0 }
 0x701   : > { %v1495_v21 = vpop.f32.mrb[26].mxu0 }
 0x702   : > { %v2050_v22 = vpop.f32.mrb[27].mxu0  ;;  %v1547_v24 = vpop.f32.mrb[24].mxu1 }
 0x703   : > { %v1553_v25 = vadd.f32 %v1547_v24, %v1493_v19  ;;  %v2055_v26 = vpop.f32.mrb[25].mxu1 }
 0x704   : > { %v1550_v27 = vpop.f32.mrb[26].mxu1 }
 0x705   : > { %v2056_v0 = vpop.f32.mrb[27].mxu1 }
 0x707   : > { %v1603_v28 = vpop.f32.mrb[28].mxu0 }
 0x708   : > { %v1609_v30 = vadd.f32 %v1603_v28, %v1553_v25  ;;  %v2061_v31 = vpop.f32.mrb[29].mxu0 }
 0x709   : > { %v1606_v32 = vpop.f32.mrb[30].mxu0 }
 0x70a   : > { %v1618_v33 = vadd.f32 %v1927_v29, %v1609_v30  ;;  %v2062_v34 = vpop.f32.mrb[31].mxu0 }
 0x70c   : > { %v1619_v35 = vadd.f32 %v1618_v33, %v3247_v5 }
 0x70e   : > { %v1620_v36 = vsel %vm656_vm1, %v1619_v35, 0.0  ;;  %v1625_v37 = vmul.f32 %v1619_v35, %v1619_v35 }
 0x70f   : > { %1621 = vadd.xlane.f32.xlu1 %v1620_v36 }
 0x710   : > { %v1626_v38 = vsel %vm656_vm1, %v1625_v37, 0.0 }
 0x711   : > { %1627 = vadd.xlane.f32.xlu0 %v1626_v38 }
 0x79c   : > { %v1622_v39 = vpop.xlane.xlu1 %1621 }
 0x79d   : > { %v1624_v40 = vmul.f32 0.03125, %v1622_v39 }
 0x79e   : > { %v1628_v44 = vpop.xlane.xlu0 %1627 }
 0x79f   : > { %v1630_v41 = vmul.f32 %v1624_v40, %v1624_v40  ;;  %v1629_v42 = vmul.f32 0.03125, %v1628_v44  ;;  %v1632_v45 = vsub.f32 %v1619_v35, %v1624_v40 }
 0x7a1   : > { %v1631_v43 = vsub.f32 %v1629_v42, %v1630_v41 }
 0x7a3   : > { %v1633_v46 = vadd.f32 1e-12, %v1631_v43 }
 0x7a5   : > { %2280 = vrsqrt.f32 %v1633_v46 }
 0x7af   : > { %v2281_v5 = vpop.eup %2280 }
 0x7b0   : > { %v1635_v23 = vmul.f32 %v2281_v5, %v1632_v45 }
 0x7b2   : > { %v1643_v49 = vmul.f32 %v1928_v47, %v1635_v23 }
 0x7b4   : > { %v1651_v50 = vadd.f32 %v1929_v48, %v1643_v49 }
 0x7b6   : > { %1652 = vst.msk [vmem:[%s625_s27] sm:$0xff] %vm656_vm1, %v1651_v50 }
 0x7b7   : > { %2635 = shalt.err (!%p2632_p12)
}
 0x7b8   : > { %s2636_s6 = scalar_lea.hbm %s3418_s3, 128  ;;  %s2640_s7 = scalar_lea.hbm %s3545_s17, 256 }
 0x7b9   : > { %p2637_p6 = scmp.ne.s32.totalorder %s3418_s3, %s2636_s6  ;;  %p2641_p9 = scmp.lt.u32.totalorder %s3418_s3, %s3545_s17 }
 0x7ba   : > { %p2642_p0 = scmp.lt.u32.totalorder %s2640_s7, %s2636_s6  ;;  %p2644_p11 = scmp.lt.u32.totalorder %s2636_s6, %s3418_s3 }
 0x7bb   : > { %p2638_p13 = pnand %p2637_p6, %p3546_p2 }
 0x7bc   : > { %p2643_p7 = por %p2642_p0, %p2641_p9 }
 0x7bd   : > { %p2639_p4 = pneg %p2638_p13 }
 0x7be   : > { %p2645_p10 = por %p2644_p11, %p2643_p7 }
 0x7c0   : > { %p2646_p1 = pnand %p2645_p10, %p2639_p4 }
 0x7c2   : > { %2649 = shalt.err (!%p2646_p1)
}
 0x7c3   : > { %2107 = dma.vmem_to_hbm [thread:$0]  (%p3546_p2), %s3420_s19, 128, %s3418_s3, %s1654_s13  }
 0x7c4 PF: > { %s1680_s28 = sand.u32 1, %s2712_s21   ;;  %p3547_p5 = scmp.ne.s32.totalorder %s3523_s0, 0 }
 0x7c5   : > { %p3548_p8 = scmp.ge.s32.totalorder %s2732_s26, 2  ;;  %s1681_s5 = scalar_lea.sflag [#allocation8], %s1680_s28 }
 0x7c7   : > { %p2148_p3 = pnand %p3548_p8, %p3547_p5 }
 0x7c9   : > { %2707 = dma.done.wait (!%p2148_p3), %s1681_s5, 128  }
 0x7ca   : > { %2709 = vsyncadd (!%p2148_p3), %s1681_s5, 4294967168  ;;  %s36_s26 = sadd.s32 1, %s2732_s26   ;;  %s3549_s21 = smov %s2716_s22 }
 0x7cb   : > { %p33_p12 = scmp.ge.s32.totalorder %s36_s26, 4   ;;  %s3550_s22 = smov %s2720_s23 }
 0x7cc   : > { %s3551_s23 = smov %s3117_s1  ;;  %s3552_s24 = smov %s2728_s25 }
 0x7cd   : > { %s3553_s25 = smov %s3555_s30  ;;  %35 = sbr.rel (!%p33_p12) target bundleno = 24 (0x18), region = 180 }
 0x7d4   :  { %1686 = vsyncpa [#allocation7], 1 }
 0x7d5   :  { %1688 = vsyncpa [#allocation7 + $0x1], 1 }
 0x7d6   :  { %1689 = vsyncpa [#allocation10], 1 }
 0x7d7   :  { %1691 = vsyncpa [#allocation10 + $0x1], 1 }
 0x7d8   :  { %1692 = vsyncpa [#allocation13], 1 }
 0x7d9   :  { %1693 = vsyncpa [#allocation16], 1 }
 0x7da   :  { %1694 = vsyncpa [#allocation19], 1 }
 0x7db   :  { %1695 = vsyncpa [#allocation22], 1 }
 0x7dc   :  { %1696 = vsyncpa [#allocation25], 1 }
 0x7dd   :  { %1697 = vsyncpa [#allocation8], 1 }
 0x7de   :  { %1699 = vsyncpa [#allocation8 + $0x1], 1 }

</bundles_post_ra>
